<compile_context>
chip_gen: v7x
topology: tpu7x:2x2x1
jax: 0.10.0
libtpu: 0.0.40
codegen_flags: <defaults>
</compile_context>

<pallas_src>
import jax
import jax.numpy as jnp
from jax.experimental import pallas as pl
from jax.experimental.pallas import tpu as pltpu

IN_FEATURES = 256 * 6 * 6          # 9216
FC1_OUT = 128
FC2_PAD = 128                      # fc2 real width 32, zero-padded to 128 lanes
OUT_PAD = 128                      # fc3 real width 15, zero-padded to 128 lanes
NUM_CLASSES = 15


def _round_up(x, m):
    return ((x + m - 1) // m) * m


def _mlp_kernel(x_ref, w1_ref, b1_ref, w2_ref, b2_ref, w3_ref, b3_ref, o_ref):
    # fc1 + ReLU: (T, 9216)bf16 @ (9216, 128)bf16 -> f32 accumulation.
    h1 = jnp.dot(x_ref[...], w1_ref[...], preferred_element_type=jnp.float32)
    h1 = jnp.maximum(h1 + b1_ref[...], 0.0).astype(jnp.bfloat16)
    # fc2 + ReLU (lane-padded 32->128; padded cols are exactly 0 after ReLU).
    h2 = jnp.dot(h1, w2_ref[...], preferred_element_type=jnp.float32)
    h2 = jnp.maximum(h2 + b2_ref[...], 0.0).astype(jnp.bfloat16)
    # fc3 (lane-padded 15->128; zero rows/cols keep padded output cols at 0).
    o_ref[...] = (
        jnp.dot(h2, w3_ref[...], preferred_element_type=jnp.float32) + b3_ref[...]
    )


def cnn2_forward(x_nchw, params, tile_n=512):
    """x_nchw: (N, 256, 6, 6) float32. Returns (N, 15) float32."""
    w1, b1, w2p, b2p, w3p, b3p = params
    n = x_nchw.shape[0]

    # torch .view(-1, 256*6*6); cast the streamed activation and the weights
    # to bf16 in the wrapper so the pallas_call inputs are already bf16
    # (halves HBM traffic and VMEM footprint; f32 accumulation in-kernel).
    x = x_nchw.reshape(n, IN_FEATURES).astype(jnp.bfloat16)
    w1b = w1.astype(jnp.bfloat16)
    w2b = w2p.astype(jnp.bfloat16)
    w3b = w3p.astype(jnp.bfloat16)

    # Batch tile: multiple of 8 sublanes, capped by tile_n. No jnp.pad of x:
    # the final partial block is clamped on load and masked on writeback by
    # Pallas; the output already has exactly n rows.
    tile = min(tile_n, _round_up(n, 8))
    # Ensure >=2 grid steps when the batch allows so the "parallel" axis spans
    # both TensorCores on v7x (halve the tile, floor 8 rows).
    while tile > 8 and pl.cdiv(n, tile) < 2:
        tile = max(8, _round_up(tile // 2, 8))
    grid = (pl.cdiv(n, tile),)

    # Advisory cost hint for XLA scheduling around the custom call.
    mm_flops = 2 * n * (IN_FEATURES * FC1_OUT + FC1_OUT * FC2_PAD + FC2_PAD * OUT_PAD)
    bytes_accessed = (
        n * IN_FEATURES * 2                                   # bf16 x stream
        + (IN_FEATURES * FC1_OUT + FC1_OUT * FC2_PAD + FC2_PAD * OUT_PAD) * 2
        + (FC1_OUT + FC2_PAD + OUT_PAD) * 4                   # f32 biases
        + n * OUT_PAD * 4                                     # f32 output
    )

    out = pl.pallas_call(
        _mlp_kernel,
        out_shape=jax.ShapeDtypeStruct((n, OUT_PAD), jnp.float32),
        grid_spec=pltpu.PrefetchScalarGridSpec(
            num_scalar_prefetch=0,
            grid=grid,
            in_specs=[
                # Streamed batch tile (double-buffered by Pallas).
                pl.BlockSpec((tile, IN_FEATURES), lambda i: (i, 0)),
                # Weights/biases: constant index_map -> fetched once, resident.
                pl.BlockSpec(w1b.shape, lambda i: (0, 0)),
                pl.BlockSpec(b1.shape, lambda i: (0, 0)),
                pl.BlockSpec(w2b.shape, lambda i: (0, 0)),
                pl.BlockSpec(b2p.shape, lambda i: (0, 0)),
                pl.BlockSpec(w3b.shape, lambda i: (0, 0)),
                pl.BlockSpec(b3p.shape, lambda i: (0, 0)),
            ],
            out_specs=pl.BlockSpec((tile, OUT_PAD), lambda i: (i, 0)),
        ),
        compiler_params=pltpu.CompilerParams(
            # Batch axis is independent -> shard across TCs on v7x.
            dimension_semantics=("parallel",),
            # ~24 MiB working set at tile=512 bf16; headroom on all gens
            # (v7x physical VMEM is 64 MiB per TC).
            vmem_limit_bytes=48 << 20,
        ),
        cost_estimate=pl.CostEstimate(
            flops=mm_flops, transcendentals=0, bytes_accessed=bytes_accessed),
    )(x, w1b, b1, w2b, b2p, w3b, b3p)
    return out[:, :NUM_CLASSES]


def init_params(key, fc1_out=128, fc2_out=32):
    """Deterministic init matching nn.Linear shapes. Weights stored transposed
    (in, out) so the kernel does x @ W. fc2/fc3 are zero-padded on their
    output axes to 128 lanes so all intermediates are lane-dense; ReLU(0)=0
    and zero w3 rows keep results identical to the unpadded net."""
    k1, k2, k3, k4, k5, k6 = jax.random.split(key, 6)

    def uni(k, shape, fan_in):
        bound = 1.0 / jnp.sqrt(fan_in)
        return jax.random.uniform(k, shape, jnp.float32, -bound, bound)

    w1 = uni(k1, (IN_FEATURES, fc1_out), IN_FEATURES)
    b1 = uni(k2, (1, fc1_out), IN_FEATURES)
    w2 = uni(k3, (fc1_out, fc2_out), fc1_out)
    b2 = uni(k4, (1, fc2_out), fc1_out)
    w3 = uni(k5, (fc2_out, NUM_CLASSES), fc2_out)
    b3 = uni(k6, (1, NUM_CLASSES), fc2_out)

    w2p = jnp.pad(w2, ((0, 0), (0, FC2_PAD - fc2_out)))
    b2p = jnp.pad(b2, ((0, 0), (0, FC2_PAD - fc2_out)))
    w3p = jnp.pad(w3, ((0, FC2_PAD - fc2_out), (0, OUT_PAD - NUM_CLASSES)))
    b3p = jnp.pad(b3, ((0, 0), (0, OUT_PAD - NUM_CLASSES)))
    return (w1, b1, w2p, b2p, w3p, b3p)


def reference_forward(x_nchw, params):
    """Matching-precision (bf16 inputs, f32 accumulation) pure-JAX reference."""
    w1, b1, w2p, b2p, w3p, b3p = params
    x = x_nchw.reshape(x_nchw.shape[0], -1).astype(jnp.bfloat16)
    h1 = jnp.dot(x, w1.astype(jnp.bfloat16), preferred_element_type=jnp.float32) + b1
    h1 = jnp.maximum(h1, 0.0).astype(jnp.bfloat16)
    h2 = jnp.dot(h1, w2p.astype(jnp.bfloat16), preferred_element_type=jnp.float32) + b2p
    h2 = jnp.maximum(h2, 0.0).astype(jnp.bfloat16)
    out = jnp.dot(h2, w3p.astype(jnp.bfloat16), preferred_element_type=jnp.float32) + b3p
    return out[:, :NUM_CLASSES]


if __name__ == "__main__":
    key = jax.random.PRNGKey(0)
    kx, kp = jax.random.split(key)
    # Small batch; feature dims (256, 6, 6) are fixed by the module's fc1.
    x = jax.random.normal(kx, (2, 256, 6, 6), jnp.float32)
    params = init_params(kp)

    out = jax.block_until_ready(cnn2_forward(x, params))
    ref = reference_forward(x, params)

    assert out.shape == (2, NUM_CLASSES)
    assert jnp.allclose(out, ref, atol=1e-2, rtol=1e-2), "mismatch vs reference"
    print("KERNEL_OK")
</pallas_src>

<mosaic_0001>
module attributes {stable_mosaic.version = 11 : i64} {
  func.func @_mlp_kernel(%arg0: i32, %arg1: memref<8x9216xbf16, #tpu.memory_space<vmem>>, %arg2: memref<9216x128xbf16, #tpu.memory_space<vmem>>, %arg3: memref<1x128xf32, #tpu.memory_space<vmem>>, %arg4: memref<128x128xbf16, #tpu.memory_space<vmem>>, %arg5: memref<1x128xf32, #tpu.memory_space<vmem>>, %arg6: memref<128x128xbf16, #tpu.memory_space<vmem>>, %arg7: memref<1x128xf32, #tpu.memory_space<vmem>>, %arg8: memref<8x128xf32, #tpu.memory_space<vmem>>) attributes {dimension_semantics = [#tpu.dimension_semantics<parallel>], iteration_bounds = array<i64: 1>, scalar_prefetch = 0 : i64, scratch_operands = 0 : i64, tpu.core_type = #tpu.core_type<tc>, window_params = [{transform_indices = @transform_0, window_bounds = array<i64: 8, 9216>}, {pipeline_mode = #tpu.pipeline_mode<synchronous>, transform_indices = @transform_1, window_bounds = array<i64: 9216, 128>}, {pipeline_mode = #tpu.pipeline_mode<synchronous>, transform_indices = @transform_2, window_bounds = array<i64: 1, 128>}, {pipeline_mode = #tpu.pipeline_mode<synchronous>, transform_indices = @transform_3, window_bounds = array<i64: 128, 128>}, {pipeline_mode = #tpu.pipeline_mode<synchronous>, transform_indices = @transform_4, window_bounds = array<i64: 1, 128>}, {pipeline_mode = #tpu.pipeline_mode<synchronous>, transform_indices = @transform_5, window_bounds = array<i64: 128, 128>}, {pipeline_mode = #tpu.pipeline_mode<synchronous>, transform_indices = @transform_6, window_bounds = array<i64: 1, 128>}, {transform_indices = @transform_7, window_bounds = array<i64: 8, 128>}]} {
    %c0 = arith.constant 0 : index
    %c0_0 = arith.constant 0 : index
    %0 = vector.load %arg1[%c0, %c0_0] : memref<8x9216xbf16, #tpu.memory_space<vmem>>, vector<8x9216xbf16>
    %c0_1 = arith.constant 0 : index
    %c0_2 = arith.constant 0 : index
    %1 = vector.load %arg2[%c0_1, %c0_2] : memref<9216x128xbf16, #tpu.memory_space<vmem>>, vector<9216x128xbf16>
    %cst = arith.constant dense<0.000000e+00> : vector<8x128xf32>
    %2 = tpu.matmul %0, %1, %cst {dimension_numbers = #tpu.dot_dimension_numbers<[1], [0], [0], [1], [0, 0, 1, 1], [], []>} : vector<8x9216xbf16>, vector<9216x128xbf16>, vector<8x128xf32> -> vector<8x128xf32>
    %c0_3 = arith.constant 0 : index
    %c0_4 = arith.constant 0 : index
    %3 = vector.load %arg3[%c0_3, %c0_4] : memref<1x128xf32, #tpu.memory_space<vmem>>, vector<1x128xf32>
    %4 = vector.broadcast %3 : vector<1x128xf32> to vector<8x128xf32>
    %5 = arith.addf %2, %4 : vector<8x128xf32>
    %cst_5 = arith.constant 0.000000e+00 : f32
    %6 = vector.broadcast %cst_5 : f32 to vector<8x128xf32>
    %7 = arith.maximumf %5, %6 : vector<8x128xf32>
    %8 = arith.truncf %7 : vector<8x128xf32> to vector<8x128xbf16>
    %c0_6 = arith.constant 0 : index
    %c0_7 = arith.constant 0 : index
    %9 = vector.load %arg4[%c0_6, %c0_7] : memref<128x128xbf16, #tpu.memory_space<vmem>>, vector<128x128xbf16>
    %cst_8 = arith.constant dense<0.000000e+00> : vector<8x128xf32>
    %10 = tpu.matmul %8, %9, %cst_8 {dimension_numbers = #tpu.dot_dimension_numbers<[1], [0], [0], [1], [0, 0, 1, 1], [], []>} : vector<8x128xbf16>, vector<128x128xbf16>, vector<8x128xf32> -> vector<8x128xf32>
    %c0_9 = arith.constant 0 : index
    %c0_10 = arith.constant 0 : index
    %11 = vector.load %arg5[%c0_9, %c0_10] : memref<1x128xf32, #tpu.memory_space<vmem>>, vector<1x128xf32>
    %12 = vector.broadcast %11 : vector<1x128xf32> to vector<8x128xf32>
    %13 = arith.addf %10, %12 : vector<8x128xf32>
    %cst_11 = arith.constant 0.000000e+00 : f32
    %14 = vector.broadcast %cst_11 : f32 to vector<8x128xf32>
    %15 = arith.maximumf %13, %14 : vector<8x128xf32>
    %16 = arith.truncf %15 : vector<8x128xf32> to vector<8x128xbf16>
    %c0_12 = arith.constant 0 : index
    %c0_13 = arith.constant 0 : index
    %17 = vector.load %arg6[%c0_12, %c0_13] : memref<128x128xbf16, #tpu.memory_space<vmem>>, vector<128x128xbf16>
    %cst_14 = arith.constant dense<0.000000e+00> : vector<8x128xf32>
    %18 = tpu.matmul %16, %17, %cst_14 {dimension_numbers = #tpu.dot_dimension_numbers<[1], [0], [0], [1], [0, 0, 1, 1], [], []>} : vector<8x128xbf16>, vector<128x128xbf16>, vector<8x128xf32> -> vector<8x128xf32>
    %c0_15 = arith.constant 0 : index
    %c0_16 = arith.constant 0 : index
    %19 = vector.load %arg7[%c0_15, %c0_16] : memref<1x128xf32, #tpu.memory_space<vmem>>, vector<1x128xf32>
    %20 = vector.broadcast %19 : vector<1x128xf32> to vector<8x128xf32>
    %21 = arith.addf %18, %20 : vector<8x128xf32>
    %c0_17 = arith.constant 0 : index
    %c0_18 = arith.constant 0 : index
    %22 = vector.load %arg8[%c0_17, %c0_18] : memref<8x128xf32, #tpu.memory_space<vmem>>, vector<8x128xf32>
    tpu.vector_store %arg8[%c0_17, %c0_18], %21 {strides = array<i32>} : memref<8x128xf32, #tpu.memory_space<vmem>>, vector<8x128xf32>,
    return
  }
  func.func @transform_0(%arg0: i32) -> (i32, i32) {
    %c0_i32 = arith.constant 0 : i32
    %c0_i32_0 = arith.constant 0 : i32
    return %arg0, %c0_i32 : i32, i32
  }
  func.func @transform_1(%arg0: i32) -> (i32, i32) {
    %c0_i32 = arith.constant 0 : i32
    %c0_i32_0 = arith.constant 0 : i32
    %c0_i32_1 = arith.constant 0 : i32
    return %c0_i32, %c0_i32_0 : i32, i32
  }
  func.func @transform_2(%arg0: i32) -> (i32, i32) {
    %c0_i32 = arith.constant 0 : i32
    %c0_i32_0 = arith.constant 0 : i32
    %c0_i32_1 = arith.constant 0 : i32
    return %c0_i32, %c0_i32_0 : i32, i32
  }
  func.func @transform_3(%arg0: i32) -> (i32, i32) {
    %c0_i32 = arith.constant 0 : i32
    %c0_i32_0 = arith.constant 0 : i32
    %c0_i32_1 = arith.constant 0 : i32
    return %c0_i32, %c0_i32_0 : i32, i32
  }
  func.func @transform_4(%arg0: i32) -> (i32, i32) {
    %c0_i32 = arith.constant 0 : i32
    %c0_i32_0 = arith.constant 0 : i32
    %c0_i32_1 = arith.constant 0 : i32
    return %c0_i32, %c0_i32_0 : i32, i32
  }
  func.func @transform_5(%arg0: i32) -> (i32, i32) {
    %c0_i32 = arith.constant 0 : i32
    %c0_i32_0 = arith.constant 0 : i32
    %c0_i32_1 = arith.constant 0 : i32
    return %c0_i32, %c0_i32_0 : i32, i32
  }
  func.func @transform_6(%arg0: i32) -> (i32, i32) {
    %c0_i32 = arith.constant 0 : i32
    %c0_i32_0 = arith.constant 0 : i32
    %c0_i32_1 = arith.constant 0 : i32
    return %c0_i32, %c0_i32_0 : i32, i32
  }
  func.func @transform_7(%arg0: i32) -> (i32, i32) {
    %c0_i32 = arith.constant 0 : i32
    %c0_i32_0 = arith.constant 0 : i32
    return %arg0, %c0_i32 : i32, i32
  }
}

</mosaic_0001>

<bundles_post_ra>
// kernel: tpu_custom_call.1
= control target key start
LH: loop header
LB: loop body
LE: loop exit
PB: predicated region body
PF: predicated region fallthrough
CT: control target
= control target key end

     0   :  { %12 = vsyncpa [#allocation3], 0  ;;  %s9761_s0 = inlined_call_operand.hbm [shape: bf16[2,9216], index: 0, kind: input, shape index: {}]   ;;  %s9762_s1 = inlined_call_operand.hbm [shape: bf16[9216,128], index: 1, kind: input, shape index: {}]   ;;  %s9763_s2 = inlined_call_operand.hbm [shape: f32[1,128], index: 2, kind: input, shape index: {}]   ;;  %s9764_s3 = inlined_call_operand.hbm [shape: bf16[128,128], index: 3, kind: input, shape index: {}]   ;;  %s9765_s4 = inlined_call_operand.hbm [shape: f32[1,128], index: 4, kind: input, shape index: {}]   ;;  %s9766_s5 = inlined_call_operand.hbm [shape: bf16[128,128], index: 5, kind: input, shape index: {}]   ;;  %s9767_s6 = inlined_call_operand.hbm [shape: f32[1,128], index: 6, kind: input, shape index: {}]   ;;  %s9768_s7 = inlined_call_operand.hbm [shape: f32[2,128], index: 7, kind: output, shape index: {}]  }
   0x1   :  { %13 = vsyncpa [#allocation6], 0 }
   0x2   :  { %14 = vsyncpa [#allocation9], 0 }
   0x3   :  { %15 = vsyncpa [#allocation12], 0 }
   0x4   :  { %16 = vsyncpa [#allocation4], 0 }
   0x5   :  { %21 = vsyncadd [#allocation3], 3456  ;;  %s9469_s24 = smov [#allocation5]   ;;  %s9283_s28 = scalar_lea.hbm %s9762_s1, 73728 }
   0x6   :  { %s34_s25 = sshll.u32 %s9469_s24, 4  ;;  %p9284_p0 = scmp.ne.s32.totalorder %s9762_s1, %s9283_s28  ;;  %s35_s25 = int_to_ptr.vmem [resolvable:$true] %s34_s25 }
   0x7   :  { %p9287_p1 = scmp.lt.u32.totalorder %s9283_s28, %s9762_s1 }
   0x9   :  { %p9289_p2 = pnand %p9287_p1, %p9284_p0 }
   0xb   :  { %9292 = shalt.err (!%p9289_p2)
}
   0xc   :  { %s9293_s10 = scalar_lea.vmem %s35_s25, 73728  ;;  %p9298_p4 = scmp.lt.s32.totalorder %s35_s25, %s35_s25 }
   0xd   :  { %p9294_p3 = scmp.ne.s32.totalorder %s35_s25, %s9293_s10  ;;  %p9299_p5 = scmp.lt.s32.totalorder %s9293_s10, %s9293_s10 }
   0xf   :  { %p9300_p6 = por %p9299_p5, %p9298_p4 }
  0x11   :  { %p9301_p7 = pnand %p9300_p6, %p9294_p3 }
  0x13   :  { %9304 = shalt.err (!%p9301_p7)
}
  0x14   :  { %s9470_s11 = smov 64   ;;  %s9471_s12 = smov 4  }
  0x15   :  { %40 = dma.hbm_to_vmem [thread:$0]  %s9762_s1, 73728, %s35_s25, [#allocation6], %s9470_s11, %s9470_s11, %s9471_s12  }
  0x16   :  { %s9472_s15 = smov [#allocation8]   ;;  %s9473_s17 = smov [#allocation11]  }
  0x17   :  { %s56_s16 = sshll.u32 %s9472_s15, 4  ;;  %s78_s18 = sshll.u32 %s9473_s17, 4  ;;  %s57_s16 = int_to_ptr.vmem [resolvable:$true] %s56_s16  ;;  %s79_s18 = int_to_ptr.vmem [resolvable:$true] %s78_s18 }
  0x18   :  { %s9305_s21 = scalar_lea.hbm %s9764_s3, 1024 }
  0x19   :  { %p9306_p8 = scmp.ne.s32.totalorder %s9764_s3, %s9305_s21  ;;  %p9309_p9 = scmp.lt.u32.totalorder %s9305_s21, %s9764_s3 }
  0x1b   :  { %p9311_p10 = pnand %p9309_p9, %p9306_p8 }
  0x1d   :  { %9314 = shalt.err (!%p9311_p10)
}
  0x1e   :  { %s9315_s1 = scalar_lea.vmem %s57_s16, 1024  ;;  %p9320_p12 = scmp.lt.s32.totalorder %s57_s16, %s57_s16 }
  0x1f   :  { %p9316_p11 = scmp.ne.s32.totalorder %s57_s16, %s9315_s1  ;;  %p9321_p13 = scmp.lt.s32.totalorder %s9315_s1, %s9315_s1 }
  0x21   :  { %p9322_p0 = por %p9321_p13, %p9320_p12 }
  0x23   :  { %p9323_p1 = pnand %p9322_p0, %p9316_p11 }
  0x25   :  { %9326 = shalt.err (!%p9323_p1)
}
  0x26   :  { %62 = dma.hbm_to_vmem [thread:$0]  %s9764_s3, 1024, %s57_s16, [#allocation9], %s9470_s11, %s9470_s11, %s9471_s12  }
  0x27   :  { %s9327_s30 = scalar_lea.hbm %s9766_s5, 1024 }
  0x28   :  { %p9328_p2 = scmp.ne.s32.totalorder %s9766_s5, %s9327_s30  ;;  %p9331_p3 = scmp.lt.u32.totalorder %s9327_s30, %s9766_s5 }
  0x2a   :  { %p9333_p4 = pnand %p9331_p3, %p9328_p2 }
  0x2c   :  { %9336 = shalt.err (!%p9333_p4)
}
  0x2d   :  { %s9337_s14 = scalar_lea.vmem %s79_s18, 1024  ;;  %p9342_p6 = scmp.lt.s32.totalorder %s79_s18, %s79_s18 }
  0x2e   :  { %p9338_p5 = scmp.ne.s32.totalorder %s79_s18, %s9337_s14  ;;  %p9343_p7 = scmp.lt.s32.totalorder %s9337_s14, %s9337_s14 }
  0x30   :  { %p9344_p8 = por %p9343_p7, %p9342_p6 }
  0x32   :  { %p9345_p9 = pnand %p9344_p8, %p9338_p5 }
  0x34   :  { %9348 = shalt.err (!%p9345_p9)
}
  0x35   :  { %84 = dma.hbm_to_vmem [thread:$0]  %s9766_s5, 1024, %s79_s18, [#allocation12], %s9470_s11, %s9470_s11, %s9471_s12  }
  0x36   :  { %s9474_s16 = smov [#allocation2]   ;;  %s9349_s21 = scalar_lea.hbm %s9761_s0, 1152 }
  0x37   :  { %s22_s17 = sshll.u32 %s9474_s16, 4  ;;  %p9350_p10 = scmp.ne.s32.totalorder %s9761_s0, %s9349_s21  ;;  %s23_s17 = int_to_ptr.vmem [resolvable:$true] %s22_s17 }
  0x38   :  { %p9353_p11 = scmp.lt.u32.totalorder %s9349_s21, %s9761_s0 }
  0x3a   :  { %p9355_p12 = pnand %p9353_p11, %p9350_p10 }
  0x3c   :  { %9358 = shalt.err (!%p9355_p12)
}
  0x3d   :  { %s9359_s1 = scalar_lea.vmem %s23_s17, 1152  ;;  %s9363_s5 = scalar_lea.vmem %s23_s17, 4608 }
  0x3e   :  { %p9360_p13 = scmp.ne.s32.totalorder %s23_s17, %s9359_s1  ;;  %p9364_p0 = scmp.lt.s32.totalorder %s23_s17, %s23_s17 }
  0x3f   :  { %p9365_p1 = scmp.lt.s32.totalorder %s9363_s5, %s9359_s1 }
  0x41   :  { %p9366_p2 = por %p9365_p1, %p9364_p0 }
  0x43   :  { %p9367_p3 = pnand %p9366_p2, %p9360_p13 }
  0x45   :  { %9370 = shalt.err (!%p9367_p3)
}
  0x46   :  { %s9475_s11 = smov 1152   ;;  %s9476_s12 = smov 72  }
  0x47   :  { %28 = dma.hbm_to_vmem [thread:$0]  %s9761_s0, 1152, %s23_s17, [#allocation3], %s9475_s11, %s9475_s11, %s9476_s12  }
  0x48   :  { %s9477_s27 = smov [#allocation7]   ;;  %s9478_s29 = smov [#allocation10]  }
  0x49   :  { %s47_s28 = sshll.u32 %s9477_s27, 4  ;;  %s69_s30 = sshll.u32 %s9478_s29, 4  ;;  %s48_s28 = int_to_ptr.vmem [resolvable:$true] %s47_s28  ;;  %s70_s30 = int_to_ptr.vmem [resolvable:$true] %s69_s30 }
  0x4a   :  { %s9371_s10 = scalar_lea.hbm %s9763_s2, 16 }
  0x4b   :  { %p9372_p4 = scmp.ne.s32.totalorder %s9763_s2, %s9371_s10  ;;  %p9375_p5 = scmp.lt.u32.totalorder %s9371_s10, %s9763_s2 }
  0x4d   :  { %p9377_p6 = pnand %p9375_p5, %p9372_p4 }
  0x4f   :  { %9380 = shalt.err (!%p9377_p6)
}
  0x50   :  { %s9381_s0 = scalar_lea.vmem %s48_s28, 16  ;;  %s9385_s16 = scalar_lea.vmem %s48_s28, 32 }
  0x51   :  { %p9382_p7 = scmp.ne.s32.totalorder %s48_s28, %s9381_s0  ;;  %p9386_p8 = scmp.lt.s32.totalorder %s48_s28, %s48_s28 }
  0x52   :  { %p9387_p9 = scmp.lt.s32.totalorder %s9385_s16, %s9381_s0 }
  0x54   :  { %p9388_p10 = por %p9387_p9, %p9386_p8 }
  0x56   :  { %p9389_p11 = pnand %p9388_p10, %p9382_p7 }
  0x58   :  { %9392 = shalt.err (!%p9389_p11)
}
  0x59   :  { %50 = dma.hbm_to_vmem [thread:$0]  %s9763_s2, 16, %s48_s28, [#allocation6]  }
  0x5a   :  { %s9393_s22 = scalar_lea.hbm %s9765_s4, 16 }
  0x5b   :  { %p9394_p12 = scmp.ne.s32.totalorder %s9765_s4, %s9393_s22  ;;  %p9397_p13 = scmp.lt.u32.totalorder %s9393_s22, %s9765_s4 }
  0x5d   :  { %p9399_p0 = pnand %p9397_p13, %p9394_p12 }
  0x5f   :  { %9402 = shalt.err (!%p9399_p0)
}
  0x60   :  { %s9403_s5 = scalar_lea.vmem %s70_s30, 16  ;;  %s9407_s11 = scalar_lea.vmem %s70_s30, 32 }
  0x61   :  { %p9404_p1 = scmp.ne.s32.totalorder %s70_s30, %s9403_s5  ;;  %p9408_p2 = scmp.lt.s32.totalorder %s70_s30, %s70_s30 }
  0x62   :  { %p9409_p3 = scmp.lt.s32.totalorder %s9407_s11, %s9403_s5 }
  0x64   :  { %p9410_p4 = por %p9409_p3, %p9408_p2 }
  0x66   :  { %p9411_p5 = pnand %p9410_p4, %p9404_p1 }
  0x68   :  { %9414 = shalt.err (!%p9411_p5)
}
  0x69   :  { %72 = dma.hbm_to_vmem [thread:$0]  %s9765_s4, 16, %s70_s30, [#allocation9]  }
  0x6a   :  { %s9479_s18 = smov [#allocation13]   ;;  %s9415_s29 = scalar_lea.hbm %s9767_s6, 16 }
  0x6b   :  { %s91_s25 = sshll.u32 %s9479_s18, 4  ;;  %p9416_p6 = scmp.ne.s32.totalorder %s9767_s6, %s9415_s29  ;;  %s92_s25 = int_to_ptr.vmem [resolvable:$true] %s91_s25 }
  0x6c   :  { %p9419_p7 = scmp.lt.u32.totalorder %s9415_s29, %s9767_s6 }
  0x6e   :  { %p9421_p8 = pnand %p9419_p7, %p9416_p6 }
  0x70   :  { %9424 = shalt.err (!%p9421_p8)
}
  0x71   :  { %s9425_s14 = scalar_lea.vmem %s92_s25, 16  ;;  %s9429_s4 = scalar_lea.vmem %s92_s25, 32 }
  0x72   :  { %p9426_p9 = scmp.ne.s32.totalorder %s92_s25, %s9425_s14  ;;  %p9430_p10 = scmp.lt.s32.totalorder %s92_s25, %s92_s25 }
  0x73   :  { %p9431_p11 = scmp.lt.s32.totalorder %s9429_s4, %s9425_s14 }
  0x75   :  { %p9432_p12 = por %p9431_p11, %p9430_p10 }
  0x77   :  { %p9433_p13 = pnand %p9432_p12, %p9426_p9 }
  0x79   :  { %9436 = shalt.err (!%p9433_p13)
}
  0x7a   :  { %94 = dma.hbm_to_vmem [thread:$0]  %s9767_s6, 16, %s92_s25, [#allocation12]  }
  0x7b   :  { %9459 = dma.done.wait [#allocation3], 4608  }
  0x7c   :  { %9460 = vsyncadd [#allocation3], 4294962688 }
  0x7d   :  { %9461 = dma.done.wait [#allocation6], 73744  }
  0x7e   :  { %9462 = vsyncadd [#allocation6], 4294893552 }
  0x7f   :  { %9463 = dma.done.wait [#allocation9], 1040  }
  0x80   :  { %9464 = vsyncadd [#allocation9], 4294966256 }
  0x81   :  { %9465 = dma.done.wait [#allocation12], 1040  }
  0x82   :  { %9466 = vsyncadd [#allocation12], 4294966256  ;;  %v8637_v0 = vld [vmem:[#allocation5 + $0x40] sm:$0xff]   ;;  %v8641_v4 = vld [vmem:[#allocation5 + $0x48] sm:$0xff]   ;;  %v9480_v24 = vmov 1966171168   ;;  %v1355_v26 = vlaneseq }
  0x83   :  { %v8638_v1 = vld [vmem:[#allocation5 + $0xc0] sm:$0xff]   ;;  %7770 = vmatprep.subr.bf16.mxu0 %v8637_v0  ;;  %v8642_v5 = vld [vmem:[#allocation5 + $0xc8] sm:$0xff]   ;;  %v8645_v8 = vld [vmem:[#allocation5 + $0x50] sm:$0xff]   ;;  %v1353_v25 = vunpack.c.l.s4 %v9480_v24  ;;  %vm9482_vm0 = vmmov 0  }
  0x84   :  { %v8639_v2 = vld [vmem:[#allocation5] sm:$0xff]   ;;  %7792 = vmatprep.subr.bf16.mxu1 %v8638_v1  ;;  %v8643_v6 = vld [vmem:[#allocation5 + $0x8] sm:$0xff]   ;;  %v8646_v9 = vld [vmem:[#allocation5 + $0xd0] sm:$0xff]   ;;  %v1356_v32 = vshrl.u32 %v1355_v26, 7 }
  0x85   :  { %v8640_v3 = vld [vmem:[#allocation5 + $0x80] sm:$0xff]   ;;  %7771 = vmatpush3.bf16.msra.mxu0 %v8639_v2  ;;  %v8644_v7 = vld [vmem:[#allocation5 + $0x88] sm:$0xff]   ;;  %v8647_v10 = vld [vmem:[#allocation5 + $0x10] sm:$0xff]   ;;  %v1354_v31 = vunpack.c.0.s8 %v1353_v25 }
  0x86   :  { %7793 = vmatpush3.bf16.msra.mxu1 %v8640_v3  ;;  %7772 = vmatprep.subr.bf16.mxu0 %v8641_v4  ;;  %v8648_v11 = vld [vmem:[#allocation5 + $0x90] sm:$0xff]   ;;  %v8649_v12 = vld [vmem:[#allocation5 + $0x58] sm:$0xff]   ;;  %v8653_v16 = vld [vmem:[#allocation5 + $0x60] sm:$0xff]  }
  0x87   :  { %7794 = vmatprep.subr.bf16.mxu1 %v8642_v5  ;;  %v8650_v13 = vld [vmem:[#allocation5 + $0xd8] sm:$0xff]   ;;  %v8654_v17 = vld [vmem:[#allocation5 + $0xe0] sm:$0xff]   ;;  %v8657_v20 = vld [vmem:[#allocation5 + $0x68] sm:$0xff]   ;;  %v9619_v37 = vsub.s32 %v1354_v31, %v1356_v32 }
  0x88   :  { %v8651_v14 = vld [vmem:[#allocation5 + $0x18] sm:$0xff]   ;;  %v8655_v18 = vld [vmem:[#allocation5 + $0x20] sm:$0xff]   ;;  %v8658_v21 = vld [vmem:[#allocation5 + $0xe8] sm:$0xff]  }
  0x89   :  { %7773 = vmatpush3.bf16.msra.mxu0 %v8643_v6  ;;  %v8652_v15 = vld [vmem:[#allocation5 + $0x98] sm:$0xff]   ;;  %v8656_v19 = vld [vmem:[#allocation5 + $0xa0] sm:$0xff]   ;;  %v8659_v22 = vld [vmem:[#allocation5 + $0x28] sm:$0xff]  }
  0x8a   :  { %7795 = vmatpush3.bf16.msra.mxu1 %v8644_v7  ;;  %7774 = vmatprep.subr.bf16.mxu0 %v8645_v8  ;;  %v8660_v23 = vld [vmem:[#allocation5 + $0xa8] sm:$0xff]   ;;  %v8661_v27 = vld [vmem:[#allocation5 + $0x70] sm:$0xff]   ;;  %v8665_v33 = vld [vmem:[#allocation5 + $0x78] sm:$0xff]  }
  0x8b   :  { %7796 = vmatprep.subr.bf16.mxu1 %v8646_v9  ;;  %v8662_v28 = vld [vmem:[#allocation5 + $0xf0] sm:$0xff]   ;;  %v8666_v34 = vld [vmem:[#allocation5 + $0xf8] sm:$0xff]   ;;  %v8669_v38 = vld [vmem:[#allocation2] ss:$72 sps:$4 sm:$0xff]  }
  0x8c   :  { %v8663_v29 = vld [vmem:[#allocation5 + $0x30] sm:$0xff]   ;;  %v8667_v35 = vld [vmem:[#allocation5 + $0x38] sm:$0xff]   ;;  %v8671_v39 = vld [vmem:[#allocation2 + $0x4] ss:$72 sps:$4 sm:$0xff]   ;;  %v1358_v42 = vrot.slane %v8669_v38, %v9619_v37 }
  0x8d   :  { %7775 = vmatpush3.bf16.msra.mxu0 %v8647_v10  ;;  %v8664_v30 = vld [vmem:[#allocation5 + $0xb0] sm:$0xff]   ;;  %v8668_v36 = vld [vmem:[#allocation5 + $0xb8] sm:$0xff]   ;;  %v8675_v43 = vld [vmem:[#allocation5 + $0x140] sm:$0xff]   ;;  %v9623_v44 = vrot.slane %v8671_v39, %v9619_v37 }
  0x8e   :  { %7797 = vmatpush3.bf16.msra.mxu1 %v8648_v11  ;;  %7776 = vmatprep.subr.bf16.mxu0 %v8649_v12  ;;  %v8672_v40 = vld [vmem:[#allocation2 + $0x90] ss:$72 sps:$4 sm:$0xff]   ;;  %v8674_v41 = vld [vmem:[#allocation2 + $0x94] ss:$72 sps:$4 sm:$0xff]   ;;  %v8676_v46 = vld [vmem:[#allocation5 + $0x1c0] sm:$0xff]  }
  0x8f   :  { %7798 = vmatprep.subr.bf16.mxu1 %v8650_v13  ;;  %v1372_v45 = vrot.slane %v8672_v40, %v9619_v37  ;;  %v9627_v47 = vrot.slane %v8674_v41, %v9619_v37  ;;  %v8677_v51 = vld [vmem:[#allocation5 + $0x100] sm:$0xff]   ;;  %v8679_v56 = vld [vmem:[#allocation5 + $0x148] sm:$0xff]   ;;  %v8683_v63 = vld [vmem:[#allocation5 + $0x150] sm:$0xff]  }
  0x90   :  { %v8678_v54 = vld [vmem:[#allocation5 + $0x180] sm:$0xff]   ;;  %v8680_v59 = vld [vmem:[#allocation5 + $0x1c8] sm:$0xff]   ;;  %v8684_v0 = vld [vmem:[#allocation5 + $0x1d0] sm:$0xff]  }
  0x91   :  { %7777 = vmatpush3.bf16.msra.mxu0 %v8651_v14  ;;  %v1381_v48 = vcombine.high %v1358_v42, %v1372_v45  ;;  %v1380_v49 = vcombine.low %v1358_v42, %v1372_v45  ;;  %v1383_v50 = vcombine.high %v9623_v44, %v9627_v47  ;;  %v8681_v60 = vld [vmem:[#allocation5 + $0x108] sm:$0xff]   ;;  %v8685_v1 = vld [vmem:[#allocation5 + $0x110] sm:$0xff]   ;;  %v8687_v3 = vld [vmem:[#allocation5 + $0x158] sm:$0xff]  }
  0x92   :  { %7799 = vmatpush3.bf16.msra.mxu1 %v8652_v15  ;;  %7778 = vmatprep.subr.bf16.mxu0 %v8653_v16  ;;  %v8682_v62 = vld [vmem:[#allocation5 + $0x188] sm:$0xff]   ;;  %v8686_v2 = vld [vmem:[#allocation5 + $0x190] sm:$0xff]   ;;  %v8688_v4 = vld [vmem:[#allocation5 + $0x1d8] sm:$0xff]  }
  0x93   :  { %7800 = vmatprep.subr.bf16.mxu1 %v8654_v17  ;;  %v1404_v52 = vrot.slane %v1381_v48, %v9619_v37  ;;  %v1390_v53 = vrot.slane %v1380_v49, %v9619_v37  ;;  %v1411_v55 = vrot.slane %v1383_v50, %v9619_v37  ;;  %v8689_v5 = vld [vmem:[#allocation5 + $0x118] sm:$0xff]   ;;  %v8691_v7 = vld [vmem:[#allocation5 + $0x160] sm:$0xff]   ;;  %v8695_v11 = vld [vmem:[#allocation5 + $0x168] sm:$0xff]  }
  0x94   :  { %v8690_v6 = vld [vmem:[#allocation5 + $0x198] sm:$0xff]   ;;  %v8692_v8 = vld [vmem:[#allocation5 + $0x1e0] sm:$0xff]   ;;  %v8696_v12 = vld [vmem:[#allocation5 + $0x1e8] sm:$0xff]  }
  0x95   :  { %7779 = vmatpush3.bf16.msra.mxu0 %v8655_v18  ;;  %5520 = vmatprep.mubr.bf16.mxu0 %v1404_v52  ;;  %v1414_v57 = vcombine.high %v1404_v52, %v1404_v52  ;;  %v1412_v58 = vcombine.high %v1390_v53, %v1390_v53  ;;  %v1415_v61 = vcombine.high %v1411_v55, %v1411_v55  ;;  %v8693_v9 = vld [vmem:[#allocation5 + $0x120] sm:$0xff]   ;;  %v8697_v13 = vld [vmem:[#allocation5 + $0x128] sm:$0xff]   ;;  %v8699_v15 = vld [vmem:[#allocation5 + $0x170] sm:$0xff]  }
  0x96   :  { %7801 = vmatpush3.bf16.msra.mxu1 %v8656_v19  ;;  %7780 = vmatprep.subr.bf16.mxu0 %v8657_v20  ;;  %v8694_v10 = vld [vmem:[#allocation5 + $0x1a0] sm:$0xff]   ;;  %v8698_v14 = vld [vmem:[#allocation5 + $0x1a8] sm:$0xff]   ;;  %v8700_v16 = vld [vmem:[#allocation5 + $0x1f0] sm:$0xff]   ;;  %v1382_v20 = vcombine.low %v9623_v44, %v9627_v47 }
  0x97   :  { %7802 = vmatprep.subr.bf16.mxu1 %v8658_v21  ;;  %5560 = vmatprep.mubr.bf16.mxu1 %v1414_v57  ;;  %v8701_v17 = vld [vmem:[#allocation5 + $0x130] sm:$0xff]   ;;  %v8703_v19 = vld [vmem:[#allocation5 + $0x178] sm:$0xff]   ;;  %v8707_v25 = vld [vmem:[#allocation5 + $0x240] sm:$0xff]  }
  0x98   :  { %v8702_v18 = vld [vmem:[#allocation5 + $0x1b0] sm:$0xff]   ;;  %v8704_v21 = vld [vmem:[#allocation5 + $0x1f8] sm:$0xff]   ;;  %v1397_v24 = vrot.slane %v1382_v20, %v9619_v37  ;;  %v8708_v26 = vld [vmem:[#allocation5 + $0x2c0] sm:$0xff]  }
  0x99   :  { %7781 = vmatpush3.bf16.msra.mxu0 %v8659_v22  ;;  %v8705_v22 = vld [vmem:[#allocation5 + $0x138] sm:$0xff]   ;;  %v8712_v31 = vld [vmem:[#allocation5 + $0x2c8] sm:$0xff]   ;;  %v8718_v38 = vld [vmem:[#allocation5 + $0x290] sm:$0xff]  }
  0x9a   :  { %7803 = vmatpush3.bf16.msra.mxu1 %v8660_v23  ;;  %7782 = vmatprep.subr.bf16.mxu0 %v8661_v27  ;;  %v8706_v23 = vld [vmem:[#allocation5 + $0x1b8] sm:$0xff]   ;;  %v8709_v27 = vld [vmem:[#allocation5 + $0x200] sm:$0xff]   ;;  %v8713_v32 = vld [vmem:[#allocation5 + $0x208] sm:$0xff]  }
  0x9b   :  { %7804 = vmatprep.subr.bf16.mxu1 %v8662_v28  ;;  %v8710_v28 = vld [vmem:[#allocation5 + $0x280] sm:$0xff]   ;;  %v8719_v39 = vld [vmem:[#allocation5 + $0x258] sm:$0xff]   ;;  %v8727_v47 = vld [vmem:[#allocation5 + $0x268] sm:$0xff]  }
  0x9c   :  { %v8720_v40 = vld [vmem:[#allocation5 + $0x2d8] sm:$0xff]   ;;  %v8724_v44 = vld [vmem:[#allocation5 + $0x2e0] sm:$0xff]   ;;  %v8728_v48 = vld [vmem:[#allocation5 + $0x2e8] sm:$0xff]  }
  0x9d   :  { %7783 = vmatpush3.bf16.msra.mxu0 %v8663_v29  ;;  %v1413_v29 = vcombine.high %v1397_v24, %v1397_v24  ;;  %v8721_v41 = vld [vmem:[#allocation5 + $0x218] sm:$0xff]   ;;  %v8725_v45 = vld [vmem:[#allocation5 + $0x220] sm:$0xff]   ;;  %v8729_v49 = vld [vmem:[#allocation5 + $0x228] sm:$0xff]  }
  0x9e   :  { %7805 = vmatpush3.bf16.msra.mxu1 %v8664_v30  ;;  %7784 = vmatprep.subr.bf16.mxu0 %v8665_v33  ;;  %v8711_v30 = vld [vmem:[#allocation5 + $0x248] sm:$0xff]   ;;  %v8722_v42 = vld [vmem:[#allocation5 + $0x298] sm:$0xff]   ;;  %v8732_v52 = vld [vmem:[#allocation5 + $0x2f0] sm:$0xff]  }
  0x9f   :  { %7806 = vmatprep.subr.bf16.mxu1 %v8666_v34  ;;  %v8714_v33 = vld [vmem:[#allocation5 + $0x288] sm:$0xff]   ;;  %v8715_v34 = vld [vmem:[#allocation5 + $0x250] sm:$0xff]   ;;  %v8737_v57 = vld [vmem:[#allocation5 + $0x238] sm:$0xff]  }
  0xa0   :  { %v8730_v50 = vld [vmem:[#allocation5 + $0x2a8] sm:$0xff]   ;;  %v8758_v20 = vld [vmem:[#allocation5 + $0x398] sm:$0xff]  }
  0xa1   :  { %7785 = vmatpush3.bf16.msra.mxu0 %v8667_v35  ;;  %v8716_v35 = vld [vmem:[#allocation5 + $0x2d0] sm:$0xff]  }
  0xa2   :  { %7807 = vmatpush3.bf16.msra.mxu1 %v8668_v36  ;;  %7814 = vmatprep.subr.bf16.mxu0 %v8675_v43  ;;  %v8717_v36 = vld [vmem:[#allocation5 + $0x210] sm:$0xff]   ;;  %v8723_v43 = vld [vmem:[#allocation5 + $0x260] sm:$0xff]  }
  0xa3   :  { %7836 = vmatprep.subr.bf16.mxu1 %v8676_v46  ;;  %v8726_v46 = vld [vmem:[#allocation5 + $0x2a0] sm:$0xff]  }
  0xa4   :  { %5521 = vmatmul.mubr.bf16.vlgmr.msra.gmra.mrb[0].mxu0 %v1390_v53  ;;  %v8733_v53 = vld [vmem:[#allocation5 + $0x230] sm:$0xff]  }
  0xa5   :  { %7815 = vmatpush3.bf16.msra.mxu0 %v8677_v51  ;;  %5561 = vmatmul.mubr.bf16.vlgmr.msra.gmra.mrb[0].mxu1 %v1412_v58  ;;  %v8731_v51 = vld [vmem:[#allocation5 + $0x270] sm:$0xff]  }
  0xa6   :  { %7816 = vmatprep.subr.bf16.mxu0 %v8679_v56  ;;  %7837 = vmatpush3.bf16.msra.mxu1 %v8678_v54  ;;  %v8734_v54 = vld [vmem:[#allocation5 + $0x2b0] sm:$0xff]   ;;  %v8736_v56 = vld [vmem:[#allocation5 + $0x2f8] sm:$0xff]  }
  0xa7   :  { %5600 = vmatprep.mubr.bf16.mxu0 %v1411_v55  ;;  %7838 = vmatprep.subr.bf16.mxu1 %v8680_v59  ;;  %v8735_v55 = vld [vmem:[#allocation5 + $0x278] sm:$0xff]   ;;  %v8739_v58 = vld [vmem:[#allocation2 + $0x8] ss:$72 sps:$4 sm:$0xff]  }
  0xa8   :  { %5640 = vmatprep.mubr.bf16.mxu1 %v1415_v61  ;;  %v8741_v59 = vld [vmem:[#allocation2 + $0x98] ss:$72 sps:$4 sm:$0xff]  }
  0xa9   :  { %7817 = vmatpush3.bf16.msra.mxu0 %v8681_v60  ;;  %v8743_v60 = vld [vmem:[#allocation5 + $0x340] sm:$0xff]   ;;  %v8738_v61 = vld [vmem:[#allocation5 + $0x2b8] sm:$0xff]  }
  0xaa   :  { %7818 = vmatprep.subr.bf16.mxu0 %v8683_v63  ;;  %7839 = vmatpush3.bf16.msra.mxu1 %v8682_v62  ;;  %v1426_v62 = vrot.slane %v8739_v58, %v9619_v37  ;;  %v1440_v63 = vrot.slane %v8741_v59, %v9619_v37  ;;  %v8787_v58 = vld [vmem:[#allocation5 + $0x410] sm:$0xff]  }
  0xab   :  { %7840 = vmatprep.subr.bf16.mxu1 %v8684_v0  ;;  %v8744_v0 = vld [vmem:[#allocation5 + $0x3c0] sm:$0xff]   ;;  %v8788_v59 = vld [vmem:[#allocation5 + $0x490] sm:$0xff]  }
  0xad   :  { %7819 = vmatpush3.bf16.msra.mxu0 %v8685_v1  ;;  %v1449_v1 = vcombine.high %v1426_v62, %v1440_v63 }
  0xae   :  { %7820 = vmatprep.subr.bf16.mxu0 %v8687_v3  ;;  %7841 = vmatpush3.bf16.msra.mxu1 %v8686_v2  ;;  %v1448_v2 = vcombine.low %v1426_v62, %v1440_v63  ;;  %v8745_v3 = vld [vmem:[#allocation5 + $0x300] sm:$0xff]   ;;  %v8791_v62 = vld [vmem:[#allocation5 + $0x418] sm:$0xff]  }
  0xaf   :  { %7842 = vmatprep.subr.bf16.mxu1 %v8688_v4  ;;  %v1472_v4 = vrot.slane %v1449_v1, %v9619_v37  ;;  %v8792_v63 = vld [vmem:[#allocation5 + $0x498] sm:$0xff]   ;;  %v8794_v1 = vld [vmem:[#allocation5 + $0x4e0] sm:$0xff]  }
  0xb1   :  { %7821 = vmatpush3.bf16.msra.mxu0 %v8689_v5  ;;  %v1458_v5 = vrot.slane %v1448_v2, %v9619_v37  ;;  %v8795_v2 = vld [vmem:[#allocation5 + $0x420] sm:$0xff]  }
  0xb2   :  { %7822 = vmatprep.subr.bf16.mxu0 %v8691_v7  ;;  %7843 = vmatpush3.bf16.msra.mxu1 %v8690_v6  ;;  %v8746_v6 = vld [vmem:[#allocation5 + $0x380] sm:$0xff]   ;;  %v8747_v7 = vld [vmem:[#allocation5 + $0x348] sm:$0xff]  }
  0xb3   :  { %7844 = vmatprep.subr.bf16.mxu1 %v8692_v8  ;;  %v1482_v8 = vcombine.high %v1472_v4, %v1472_v4 }
  0xb5   :  { %7823 = vmatpush3.bf16.msra.mxu0 %v8693_v9  ;;  %v1480_v9 = vcombine.high %v1458_v5, %v1458_v5 }
  0xb6   :  { %7824 = vmatprep.subr.bf16.mxu0 %v8695_v11  ;;  %7845 = vmatpush3.bf16.msra.mxu1 %v8694_v10  ;;  %v8748_v10 = vld [vmem:[#allocation5 + $0x3c8] sm:$0xff]  }
  0xb7   :  { %7846 = vmatprep.subr.bf16.mxu1 %v8696_v12  ;;  %v8749_v11 = vld [vmem:[#allocation5 + $0x308] sm:$0xff]  }
  0xb8   :  { %v8750_v12 = vld [vmem:[#allocation5 + $0x388] sm:$0xff]  }
  0xb9   :  { %7825 = vmatpush3.bf16.msra.mxu0 %v8697_v13  ;;  %v8751_v13 = vld [vmem:[#allocation5 + $0x350] sm:$0xff]  }
  0xba   :  { %7826 = vmatprep.subr.bf16.mxu0 %v8699_v15  ;;  %7847 = vmatpush3.bf16.msra.mxu1 %v8698_v14  ;;  %v8752_v14 = vld [vmem:[#allocation5 + $0x3d0] sm:$0xff]  }
  0xbb   :  { %7848 = vmatprep.subr.bf16.mxu1 %v8700_v16  ;;  %v8753_v15 = vld [vmem:[#allocation5 + $0x310] sm:$0xff]  }
  0xbc   :  { %v8754_v16 = vld [vmem:[#allocation5 + $0x390] sm:$0xff]  }
  0xbd   :  { %7827 = vmatpush3.bf16.msra.mxu0 %v8701_v17  ;;  %v8755_v17 = vld [vmem:[#allocation5 + $0x358] sm:$0xff]  }
  0xbe   :  { %7828 = vmatprep.subr.bf16.mxu0 %v8703_v19  ;;  %7849 = vmatpush3.bf16.msra.mxu1 %v8702_v18  ;;  %v8756_v18 = vld [vmem:[#allocation5 + $0x3d8] sm:$0xff]  }
  0xbf   :  { %7850 = vmatprep.subr.bf16.mxu1 %v8704_v21  ;;  %v8757_v19 = vld [vmem:[#allocation5 + $0x318] sm:$0xff]   ;;  %v8759_v21 = vld [vmem:[#allocation5 + $0x360] sm:$0xff]  }
  0xc1   :  { %7829 = vmatpush3.bf16.msra.mxu0 %v8705_v22  ;;  %v8760_v22 = vld [vmem:[#allocation5 + $0x3e0] sm:$0xff]  }
  0xc2   :  { %7858 = vmatprep.subr.bf16.mxu0 %v8707_v25  ;;  %7851 = vmatpush3.bf16.msra.mxu1 %v8706_v23  ;;  %v8761_v23 = vld [vmem:[#allocation5 + $0x320] sm:$0xff]   ;;  %v8763_v25 = vld [vmem:[#allocation5 + $0x368] sm:$0xff]  }
  0xc3   :  { %7880 = vmatprep.subr.bf16.mxu1 %v8708_v26  ;;  %v8764_v26 = vld [vmem:[#allocation5 + $0x3e8] sm:$0xff]  }
  0xc4   :  { %5601 = vmatmul.mubr.bf16.vlgmr.msra.gmra.mrb[4].mxu0 %v1397_v24  ;;  %v8762_v24 = vld [vmem:[#allocation5 + $0x3a0] sm:$0xff]  }
  0xc5   :  { %7859 = vmatpush3.bf16.msra.mxu0 %v8709_v27  ;;  %5641 = vmatmul.mubr.bf16.vlgmr.msra.gmra.mrb[4].mxu1 %v1413_v29  ;;  %v8765_v27 = vld [vmem:[#allocation5 + $0x328] sm:$0xff]   ;;  %v8767_v29 = vld [vmem:[#allocation5 + $0x370] sm:$0xff]  }
  0xc6   :  { %7860 = vmatprep.subr.bf16.mxu0 %v8711_v30  ;;  %7881 = vmatpush3.bf16.msra.mxu1 %v8710_v28  ;;  %v8766_v28 = vld [vmem:[#allocation5 + $0x3a8] sm:$0xff]   ;;  %v8768_v30 = vld [vmem:[#allocation5 + $0x3f0] sm:$0xff]  }
  0xc7   :  { %7882 = vmatprep.subr.bf16.mxu1 %v8712_v31  ;;  %5680 = vmatprep.mubr.bf16.mxu0 %v1472_v4  ;;  %v8769_v31 = vld [vmem:[#allocation5 + $0x330] sm:$0xff]   ;;  %v8797_v4 = vld [vmem:[#allocation5 + $0x468] sm:$0xff]  }
  0xc8   :  { %5720 = vmatprep.mubr.bf16.mxu1 %v1482_v8  ;;  %v8801_v8 = vld [vmem:[#allocation5 + $0x470] sm:$0xff]  }
  0xc9   :  { %7861 = vmatpush3.bf16.msra.mxu0 %v8713_v32  ;;  %v8770_v32 = vld [vmem:[#allocation5 + $0x3b0] sm:$0xff]  }
  0xca   :  { %7862 = vmatprep.subr.bf16.mxu0 %v8715_v34  ;;  %7883 = vmatpush3.bf16.msra.mxu1 %v8714_v33  ;;  %v8771_v33 = vld [vmem:[#allocation5 + $0x378] sm:$0xff]  }
  0xcb   :  { %7884 = vmatprep.subr.bf16.mxu1 %v8716_v35  ;;  %v8772_v34 = vld [vmem:[#allocation5 + $0x3f8] sm:$0xff]   ;;  %v8775_v35 = vld [vmem:[#allocation2 + $0xc] ss:$72 sps:$4 sm:$0xff]  }
  0xcd   :  { %7863 = vmatpush3.bf16.msra.mxu0 %v8717_v36  ;;  %v8776_v36 = vld [vmem:[#allocation2 + $0x9c] ss:$72 sps:$4 sm:$0xff]  }
  0xce   :  { %7864 = vmatprep.subr.bf16.mxu0 %v8719_v39  ;;  %7885 = vmatpush3.bf16.msra.mxu1 %v8718_v38  ;;  %v8773_v38 = vld [vmem:[#allocation5 + $0x338] sm:$0xff]   ;;  %v1433_v39 = vrot.slane %v8775_v35, %v9619_v37  ;;  %v8822_v35 = vld [vmem:[#allocation5 + $0x5d0] sm:$0xff]  }
  0xcf   :  { %7886 = vmatprep.subr.bf16.mxu1 %v8720_v40  ;;  %v1447_v40 = vrot.slane %v8776_v36, %v9619_v37  ;;  %v8823_v36 = vld [vmem:[#allocation5 + $0x510] sm:$0xff]  }
  0xd1   :  { %7865 = vmatpush3.bf16.msra.mxu0 %v8721_v41  ;;  %v8777_v41 = vld [vmem:[#allocation5 + $0x440] sm:$0xff]  }
  0xd2   :  { %7866 = vmatprep.subr.bf16.mxu0 %v8723_v43  ;;  %7887 = vmatpush3.bf16.msra.mxu1 %v8722_v42  ;;  %v8774_v42 = vld [vmem:[#allocation5 + $0x3b8] sm:$0xff]   ;;  %v1451_v43 = vcombine.high %v1433_v39, %v1447_v40 }
  0xd3   :  { %7888 = vmatprep.subr.bf16.mxu1 %v8724_v44  ;;  %v1450_v44 = vcombine.low %v1433_v39, %v1447_v40  ;;  %v8825_v39 = vld [vmem:[#allocation5 + $0x558] sm:$0xff]  }
  0xd4   :  { %v8826_v40 = vld [vmem:[#allocation5 + $0x5d8] sm:$0xff]  }
  0xd5   :  { %7867 = vmatpush3.bf16.msra.mxu0 %v8725_v45  ;;  %v8778_v45 = vld [vmem:[#allocation5 + $0x4c0] sm:$0xff]  }
  0xd6   :  { %7868 = vmatprep.subr.bf16.mxu0 %v8727_v47  ;;  %7889 = vmatpush3.bf16.msra.mxu1 %v8726_v46  ;;  %v8779_v46 = vld [vmem:[#allocation5 + $0x400] sm:$0xff]   ;;  %v1479_v47 = vrot.slane %v1451_v43, %v9619_v37 }
  0xd7   :  { %7890 = vmatprep.subr.bf16.mxu1 %v8728_v48  ;;  %v1465_v48 = vrot.slane %v1450_v44, %v9619_v37  ;;  %v8829_v43 = vld [vmem:[#allocation5 + $0x560] sm:$0xff]  }
  0xd8   :  { %v8830_v44 = vld [vmem:[#allocation5 + $0x5e0] sm:$0xff]  }
  0xd9   :  { %7869 = vmatpush3.bf16.msra.mxu0 %v8729_v49  ;;  %v8780_v49 = vld [vmem:[#allocation5 + $0x480] sm:$0xff]  }
  0xda   :  { %7870 = vmatprep.subr.bf16.mxu0 %v8731_v51  ;;  %7891 = vmatpush3.bf16.msra.mxu1 %v8730_v50  ;;  %v8781_v50 = vld [vmem:[#allocation5 + $0x448] sm:$0xff]   ;;  %v1483_v51 = vcombine.high %v1479_v47, %v1479_v47 }
  0xdb   :  { %7892 = vmatprep.subr.bf16.mxu1 %v8732_v52  ;;  %v1481_v52 = vcombine.high %v1465_v48, %v1465_v48 }
  0xdd   :  { %7871 = vmatpush3.bf16.msra.mxu0 %v8733_v53  ;;  %v8782_v53 = vld [vmem:[#allocation5 + $0x4c8] sm:$0xff]  }
  0xde   :  { %7872 = vmatprep.subr.bf16.mxu0 %v8735_v55  ;;  %7893 = vmatpush3.bf16.msra.mxu1 %v8734_v54  ;;  %v8783_v54 = vld [vmem:[#allocation5 + $0x408] sm:$0xff]  }
  0xdf   :  { %7894 = vmatprep.subr.bf16.mxu1 %v8736_v56  ;;  %v8784_v55 = vld [vmem:[#allocation5 + $0x488] sm:$0xff]   ;;  %v8785_v56 = vld [vmem:[#allocation5 + $0x450] sm:$0xff]  }
  0xe1   :  { %7873 = vmatpush3.bf16.msra.mxu0 %v8737_v57  ;;  %v8786_v57 = vld [vmem:[#allocation5 + $0x4d0] sm:$0xff]  }
  0xe2   :  { %7902 = vmatprep.subr.bf16.mxu0 %v8743_v60  ;;  %7895 = vmatpush3.bf16.msra.mxu1 %v8738_v61  ;;  %v8789_v60 = vld [vmem:[#allocation5 + $0x458] sm:$0xff]  }
  0xe3   :  { %7924 = vmatprep.subr.bf16.mxu1 %v8744_v0  ;;  %v8790_v61 = vld [vmem:[#allocation5 + $0x4d8] sm:$0xff]   ;;  %v8793_v0 = vld [vmem:[#allocation5 + $0x460] sm:$0xff]  }
  0xe4   :  { %5681 = vmatmul.mubr.bf16.vlgmr.msra.gmra.mrb[8].mxu0 %v1458_v5  ;;  %v8798_v5 = vld [vmem:[#allocation5 + $0x4e8] sm:$0xff]  }
  0xe5   :  { %7903 = vmatpush3.bf16.msra.mxu0 %v8745_v3  ;;  %5721 = vmatmul.mubr.bf16.vlgmr.msra.gmra.mrb[8].mxu1 %v1480_v9  ;;  %v8796_v3 = vld [vmem:[#allocation5 + $0x4a0] sm:$0xff]   ;;  %v8802_v9 = vld [vmem:[#allocation5 + $0x4f0] sm:$0xff]  }
  0xe6   :  { %7904 = vmatprep.subr.bf16.mxu0 %v8747_v7  ;;  %7925 = vmatpush3.bf16.msra.mxu1 %v8746_v6  ;;  %v8799_v6 = vld [vmem:[#allocation5 + $0x428] sm:$0xff]  }
  0xe7   :  { %7926 = vmatprep.subr.bf16.mxu1 %v8748_v10  ;;  %5760 = vmatprep.mubr.bf16.mxu0 %v1479_v47  ;;  %v8800_v7 = vld [vmem:[#allocation5 + $0x4a8] sm:$0xff]   ;;  %v8803_v10 = vld [vmem:[#allocation5 + $0x430] sm:$0xff]  }
  0xe8   :  { %5800 = vmatprep.mubr.bf16.mxu1 %v1483_v51  ;;  %v8833_v47 = vld [vmem:[#allocation5 + $0x568] sm:$0xff]   ;;  %v8837_v51 = vld [vmem:[#allocation5 + $0x570] sm:$0xff]  }
  0xe9   :  { %7905 = vmatpush3.bf16.msra.mxu0 %v8749_v11  ;;  %v8804_v11 = vld [vmem:[#allocation5 + $0x4b0] sm:$0xff]  }
  0xea   :  { %7906 = vmatprep.subr.bf16.mxu0 %v8751_v13  ;;  %7927 = vmatpush3.bf16.msra.mxu1 %v8750_v12  ;;  %v8805_v12 = vld [vmem:[#allocation5 + $0x478] sm:$0xff]  }
  0xeb   :  { %7928 = vmatprep.subr.bf16.mxu1 %v8752_v14  ;;  %v8806_v13 = vld [vmem:[#allocation5 + $0x4f8] sm:$0xff]  }
  0xec   :  { %v8807_v14 = vld [vmem:[#allocation5 + $0x438] sm:$0xff]  }
  0xed   :  { %7907 = vmatpush3.bf16.msra.mxu0 %v8753_v15  ;;  %v8809_v15 = vld [vmem:[#allocation2 + $0x10] ss:$72 sps:$4 sm:$0xff]  }
  0xee   :  { %7908 = vmatprep.subr.bf16.mxu0 %v8755_v17  ;;  %7929 = vmatpush3.bf16.msra.mxu1 %v8754_v16  ;;  %v8811_v16 = vld [vmem:[#allocation2 + $0xa0] ss:$72 sps:$4 sm:$0xff]   ;;  %v1494_v17 = vrot.slane %v8809_v15, %v9619_v37  ;;  %v8857_v15 = vld [vmem:[#allocation5 + $0x610] sm:$0xff]  }
  0xef   :  { %7930 = vmatprep.subr.bf16.mxu1 %v8756_v18  ;;  %v8813_v18 = vld [vmem:[#allocation5 + $0x540] sm:$0xff]  }
  0xf1   :  { %7909 = vmatpush3.bf16.msra.mxu0 %v8757_v19  ;;  %v8808_v19 = vld [vmem:[#allocation5 + $0x4b8] sm:$0xff]  }
  0xf2   :  { %7910 = vmatprep.subr.bf16.mxu0 %v8759_v21  ;;  %7931 = vmatpush3.bf16.msra.mxu1 %v8758_v20  ;;  %v1508_v20 = vrot.slane %v8811_v16, %v9619_v37  ;;  %v8814_v21 = vld [vmem:[#allocation5 + $0x5c0] sm:$0xff]   ;;  %v8858_v16 = vld [vmem:[#allocation5 + $0x690] sm:$0xff]  }
  0xf3   :  { %7932 = vmatprep.subr.bf16.mxu1 %v8760_v22 }
  0xf4   :  { %v1517_v22 = vcombine.high %v1494_v17, %v1508_v20 }
  0xf5   :  { %7911 = vmatpush3.bf16.msra.mxu0 %v8761_v23  ;;  %v1516_v23 = vcombine.low %v1494_v17, %v1508_v20  ;;  %v8859_v17 = vld [vmem:[#allocation5 + $0x658] sm:$0xff]  }
  0xf6   :  { %7912 = vmatprep.subr.bf16.mxu0 %v8763_v25  ;;  %7933 = vmatpush3.bf16.msra.mxu1 %v8762_v24  ;;  %v8815_v24 = vld [vmem:[#allocation5 + $0x500] sm:$0xff]   ;;  %v1540_v25 = vrot.slane %v1517_v22, %v9619_v37  ;;  %v8862_v20 = vld [vmem:[#allocation5 + $0x698] sm:$0xff]  }
  0xf7   :  { %7934 = vmatprep.subr.bf16.mxu1 %v8764_v26  ;;  %v1526_v26 = vrot.slane %v1516_v23, %v9619_v37  ;;  %v8864_v22 = vld [vmem:[#allocation5 + $0x6e0] sm:$0xff]  }
  0xf8   :  { %v8865_v23 = vld [vmem:[#allocation5 + $0x620] sm:$0xff]  }
  0xf9   :  { %7913 = vmatpush3.bf16.msra.mxu0 %v8765_v27  ;;  %v8816_v27 = vld [vmem:[#allocation5 + $0x580] sm:$0xff]  }
  0xfa   :  { %7914 = vmatprep.subr.bf16.mxu0 %v8767_v29  ;;  %7935 = vmatpush3.bf16.msra.mxu1 %v8766_v28  ;;  %v8817_v28 = vld [vmem:[#allocation5 + $0x548] sm:$0xff]   ;;  %v1550_v29 = vcombine.high %v1540_v25, %v1540_v25 }
  0xfb   :  { %7936 = vmatprep.subr.bf16.mxu1 %v8768_v30  ;;  %v1548_v30 = vcombine.high %v1526_v26, %v1526_v26 }
  0xfd   :  { %7915 = vmatpush3.bf16.msra.mxu0 %v8769_v31  ;;  %v8818_v31 = vld [vmem:[#allocation5 + $0x5c8] sm:$0xff]  }
  0xfe   :  { %7916 = vmatprep.subr.bf16.mxu0 %v8771_v33  ;;  %7937 = vmatpush3.bf16.msra.mxu1 %v8770_v32  ;;  %v8819_v32 = vld [vmem:[#allocation5 + $0x508] sm:$0xff]  }
  0xff   :  { %7938 = vmatprep.subr.bf16.mxu1 %v8772_v34  ;;  %v8820_v33 = vld [vmem:[#allocation5 + $0x588] sm:$0xff]   ;;  %v8821_v34 = vld [vmem:[#allocation5 + $0x550] sm:$0xff]  }
 0x101   :  { %7917 = vmatpush3.bf16.msra.mxu0 %v8773_v38  ;;  %v8824_v38 = vld [vmem:[#allocation5 + $0x590] sm:$0xff]  }
 0x102   :  { %7946 = vmatprep.subr.bf16.mxu0 %v8777_v41  ;;  %7939 = vmatpush3.bf16.msra.mxu1 %v8774_v42  ;;  %v8827_v41 = vld [vmem:[#allocation5 + $0x518] sm:$0xff]  }
 0x103   :  { %7968 = vmatprep.subr.bf16.mxu1 %v8778_v45  ;;  %v8828_v42 = vld [vmem:[#allocation5 + $0x598] sm:$0xff]   ;;  %v8831_v45 = vld [vmem:[#allocation5 + $0x520] sm:$0xff]  }
 0x104   :  { %5761 = vmatmul.mubr.bf16.vlgmr.msra.gmra.mrb[12].mxu0 %v1465_v48  ;;  %v8834_v48 = vld [vmem:[#allocation5 + $0x5e8] sm:$0xff]  }
 0x105   :  { %7947 = vmatpush3.bf16.msra.mxu0 %v8779_v46  ;;  %5801 = vmatmul.mubr.bf16.vlgmr.msra.gmra.mrb[12].mxu1 %v1481_v52  ;;  %v8832_v46 = vld [vmem:[#allocation5 + $0x5a0] sm:$0xff]   ;;  %v8838_v52 = vld [vmem:[#allocation5 + $0x5f0] sm:$0xff]  }
 0x106   :  { %7948 = vmatprep.subr.bf16.mxu0 %v8781_v50  ;;  %7969 = vmatpush3.bf16.msra.mxu1 %v8780_v49  ;;  %v8835_v49 = vld [vmem:[#allocation5 + $0x528] sm:$0xff]  }
 0x107   :  { %7970 = vmatprep.subr.bf16.mxu1 %v8782_v53  ;;  %5840 = vmatprep.mubr.bf16.mxu0 %v1540_v25  ;;  %v8836_v50 = vld [vmem:[#allocation5 + $0x5a8] sm:$0xff]   ;;  %v8839_v53 = vld [vmem:[#allocation5 + $0x530] sm:$0xff]  }
 0x108   :  { %5880 = vmatprep.mubr.bf16.mxu1 %v1550_v29  ;;  %v8867_v25 = vld [vmem:[#allocation5 + $0x668] sm:$0xff]   ;;  %v8871_v29 = vld [vmem:[#allocation5 + $0x670] sm:$0xff]  }
 0x109   :  { %7949 = vmatpush3.bf16.msra.mxu0 %v8783_v54  ;;  %v8840_v54 = vld [vmem:[#allocation5 + $0x5b0] sm:$0xff]  }
 0x10a   :  { %7950 = vmatprep.subr.bf16.mxu0 %v8785_v56  ;;  %7971 = vmatpush3.bf16.msra.mxu1 %v8784_v55  ;;  %v8841_v55 = vld [vmem:[#allocation5 + $0x578] sm:$0xff]  }
 0x10b   :  { %7972 = vmatprep.subr.bf16.mxu1 %v8786_v57  ;;  %v8842_v56 = vld [vmem:[#allocation5 + $0x5f8] sm:$0xff]  }
 0x10c   :  { %v8845_v57 = vld [vmem:[#allocation2 + $0x14] ss:$72 sps:$4 sm:$0xff]  }
 0x10d   :  { %7951 = vmatpush3.bf16.msra.mxu0 %v8787_v58  ;;  %v8846_v58 = vld [vmem:[#allocation2 + $0xa4] ss:$72 sps:$4 sm:$0xff]  }
 0x10e   :  { %7952 = vmatprep.subr.bf16.mxu0 %v8789_v60  ;;  %7973 = vmatpush3.bf16.msra.mxu1 %v8788_v59  ;;  %v8843_v59 = vld [vmem:[#allocation5 + $0x538] sm:$0xff]  }
 0x10f   :  { %7974 = vmatprep.subr.bf16.mxu1 %v8790_v61  ;;  %v8844_v60 = vld [vmem:[#allocation5 + $0x5b8] sm:$0xff]   ;;  %v1501_v61 = vrot.slane %v8845_v57, %v9619_v37  ;;  %v8892_v57 = vld [vmem:[#allocation5 + $0x7d0] sm:$0xff]  }
 0x111   :  { %7953 = vmatpush3.bf16.msra.mxu0 %v8791_v62  ;;  %v1515_v62 = vrot.slane %v8846_v58, %v9619_v37  ;;  %v8893_v58 = vld [vmem:[#allocation5 + $0x710] sm:$0xff]  }
 0x112   :  { %7954 = vmatprep.subr.bf16.mxu0 %v8793_v0  ;;  %7975 = vmatpush3.bf16.msra.mxu1 %v8792_v63  ;;  %v8847_v63 = vld [vmem:[#allocation5 + $0x640] sm:$0xff]  }
 0x113   :  { %7976 = vmatprep.subr.bf16.mxu1 %v8794_v1  ;;  %v1519_v0 = vcombine.high %v1501_v61, %v1515_v62  ;;  %v1518_v1 = vcombine.low %v1501_v61, %v1515_v62  ;;  %v8896_v61 = vld [vmem:[#allocation5 + $0x7d8] sm:$0xff]  }
 0x114   :  { %v8897_v62 = vld [vmem:[#allocation5 + $0x718] sm:$0xff]  }
 0x115   :  { %7955 = vmatpush3.bf16.msra.mxu0 %v8795_v2  ;;  %v8848_v2 = vld [vmem:[#allocation5 + $0x6c0] sm:$0xff]  }
 0x116   :  { %7956 = vmatprep.subr.bf16.mxu0 %v8797_v4  ;;  %7977 = vmatpush3.bf16.msra.mxu1 %v8796_v3  ;;  %v8849_v3 = vld [vmem:[#allocation5 + $0x600] sm:$0xff]   ;;  %v1547_v4 = vrot.slane %v1519_v0, %v9619_v37 }
 0x117   :  { %7978 = vmatprep.subr.bf16.mxu1 %v8798_v5  ;;  %v1533_v5 = vrot.slane %v1518_v1, %v9619_v37  ;;  %v8899_v0 = vld [vmem:[#allocation5 + $0x760] sm:$0xff]  }
 0x118   :  { %v8900_v1 = vld [vmem:[#allocation5 + $0x7e0] sm:$0xff]  }
 0x119   :  { %7957 = vmatpush3.bf16.msra.mxu0 %v8799_v6  ;;  %v8850_v6 = vld [vmem:[#allocation5 + $0x680] sm:$0xff]  }
 0x11a   :  { %7958 = vmatprep.subr.bf16.mxu0 %v8801_v8  ;;  %7979 = vmatpush3.bf16.msra.mxu1 %v8800_v7  ;;  %v8851_v7 = vld [vmem:[#allocation5 + $0x648] sm:$0xff]   ;;  %v1551_v8 = vcombine.high %v1547_v4, %v1547_v4 }
 0x11b   :  { %7980 = vmatprep.subr.bf16.mxu1 %v8802_v9  ;;  %v1549_v9 = vcombine.high %v1533_v5, %v1533_v5 }
 0x11d   :  { %7959 = vmatpush3.bf16.msra.mxu0 %v8803_v10  ;;  %v8852_v10 = vld [vmem:[#allocation5 + $0x6c8] sm:$0xff]  }
 0x11e   :  { %7960 = vmatprep.subr.bf16.mxu0 %v8805_v12  ;;  %7981 = vmatpush3.bf16.msra.mxu1 %v8804_v11  ;;  %v8853_v11 = vld [vmem:[#allocation5 + $0x608] sm:$0xff]  }
 0x11f   :  { %7982 = vmatprep.subr.bf16.mxu1 %v8806_v13  ;;  %v8854_v12 = vld [vmem:[#allocation5 + $0x688] sm:$0xff]   ;;  %v8855_v13 = vld [vmem:[#allocation5 + $0x650] sm:$0xff]  }
 0x121   :  { %7961 = vmatpush3.bf16.msra.mxu0 %v8807_v14  ;;  %v8856_v14 = vld [vmem:[#allocation5 + $0x6d0] sm:$0xff]  }
 0x122   :  { %7990 = vmatprep.subr.bf16.mxu0 %v8813_v18  ;;  %7983 = vmatpush3.bf16.msra.mxu1 %v8808_v19  ;;  %v8860_v18 = vld [vmem:[#allocation5 + $0x6d8] sm:$0xff]  }
 0x123   :  { %8012 = vmatprep.subr.bf16.mxu1 %v8814_v21  ;;  %v8861_v19 = vld [vmem:[#allocation5 + $0x618] sm:$0xff]   ;;  %v8863_v21 = vld [vmem:[#allocation5 + $0x660] sm:$0xff]  }
 0x124   :  { %5841 = vmatmul.mubr.bf16.vlgmr.msra.gmra.mrb[16].mxu0 %v1526_v26  ;;  %v8868_v26 = vld [vmem:[#allocation5 + $0x6e8] sm:$0xff]  }
 0x125   :  { %7991 = vmatpush3.bf16.msra.mxu0 %v8815_v24  ;;  %5881 = vmatmul.mubr.bf16.vlgmr.msra.gmra.mrb[16].mxu1 %v1548_v30  ;;  %v8866_v24 = vld [vmem:[#allocation5 + $0x6a0] sm:$0xff]   ;;  %v8872_v30 = vld [vmem:[#allocation5 + $0x6f0] sm:$0xff]  }
 0x126   :  { %7992 = vmatprep.subr.bf16.mxu0 %v8817_v28  ;;  %8013 = vmatpush3.bf16.msra.mxu1 %v8816_v27  ;;  %v8869_v27 = vld [vmem:[#allocation5 + $0x628] sm:$0xff]  }
 0x127   :  { %8014 = vmatprep.subr.bf16.mxu1 %v8818_v31  ;;  %5920 = vmatprep.mubr.bf16.mxu0 %v1547_v4  ;;  %v8870_v28 = vld [vmem:[#allocation5 + $0x6a8] sm:$0xff]   ;;  %v8873_v31 = vld [vmem:[#allocation5 + $0x630] sm:$0xff]   ;;  %v7175_v4 = vld [vmem:[#allocation7] ss:$0 sm:$0xff] }
 0x128   :  { %5960 = vmatprep.mubr.bf16.mxu1 %v1551_v8 }
 0x129   :  { %7993 = vmatpush3.bf16.msra.mxu0 %v8819_v32  ;;  %v8874_v32 = vld [vmem:[#allocation5 + $0x6b0] sm:$0xff]  }
 0x12a   :  { %7994 = vmatprep.subr.bf16.mxu0 %v8821_v34  ;;  %8015 = vmatpush3.bf16.msra.mxu1 %v8820_v33  ;;  %v8875_v33 = vld [vmem:[#allocation5 + $0x678] sm:$0xff]  }
 0x12b   :  { %8016 = vmatprep.subr.bf16.mxu1 %v8822_v35  ;;  %v8876_v34 = vld [vmem:[#allocation5 + $0x6f8] sm:$0xff]  }
 0x12c   :  { %v8877_v35 = vld [vmem:[#allocation5 + $0x638] sm:$0xff]  }
 0x12d   :  { %7995 = vmatpush3.bf16.msra.mxu0 %v8823_v36  ;;  %v8879_v36 = vld [vmem:[#allocation2 + $0x18] ss:$72 sps:$4 sm:$0xff]  }
 0x12e   :  { %7996 = vmatprep.subr.bf16.mxu0 %v8825_v39  ;;  %8017 = vmatpush3.bf16.msra.mxu1 %v8824_v38  ;;  %v8881_v38 = vld [vmem:[#allocation2 + $0xa8] ss:$72 sps:$4 sm:$0xff]   ;;  %v8883_v39 = vld [vmem:[#allocation5 + $0x740] sm:$0xff]  }
 0x12f   :  { %8018 = vmatprep.subr.bf16.mxu1 %v8826_v40  ;;  %v8878_v40 = vld [vmem:[#allocation5 + $0x6b8] sm:$0xff]  }
 0x131   :  { %7997 = vmatpush3.bf16.msra.mxu0 %v8827_v41  ;;  %v1562_v41 = vrot.slane %v8879_v36, %v9619_v37 }
 0x132   :  { %7998 = vmatprep.subr.bf16.mxu0 %v8829_v43  ;;  %8019 = vmatpush3.bf16.msra.mxu1 %v8828_v42  ;;  %v1576_v42 = vrot.slane %v8881_v38, %v9619_v37  ;;  %v8884_v43 = vld [vmem:[#allocation5 + $0x7c0] sm:$0xff]  }
 0x133   :  { %8020 = vmatprep.subr.bf16.mxu1 %v8830_v44  ;;  %v8919_v38 = vld [vmem:[#allocation5 + $0x800] sm:$0xff]  }
 0x134   :  { %v1585_v44 = vcombine.high %v1562_v41, %v1576_v42 }
 0x135   :  { %7999 = vmatpush3.bf16.msra.mxu0 %v8831_v45  ;;  %v1584_v45 = vcombine.low %v1562_v41, %v1576_v42  ;;  %v8920_v41 = vld [vmem:[#allocation5 + $0x880] sm:$0xff]   ;;  %v8921_v42 = vld [vmem:[#allocation5 + $0x848] sm:$0xff]  }
 0x136   :  { %8000 = vmatprep.subr.bf16.mxu0 %v8833_v47  ;;  %8021 = vmatpush3.bf16.msra.mxu1 %v8832_v46  ;;  %v8885_v46 = vld [vmem:[#allocation5 + $0x700] sm:$0xff]   ;;  %v1608_v47 = vrot.slane %v1585_v44, %v9619_v37 }
 0x137   :  { %8022 = vmatprep.subr.bf16.mxu1 %v8834_v48  ;;  %v1594_v48 = vrot.slane %v1584_v45, %v9619_v37  ;;  %v8922_v45 = vld [vmem:[#allocation5 + $0x8c8] sm:$0xff]  }
 0x139   :  { %8001 = vmatpush3.bf16.msra.mxu0 %v8835_v49  ;;  %v8886_v49 = vld [vmem:[#allocation5 + $0x780] sm:$0xff]  }
 0x13a   :  { %8002 = vmatprep.subr.bf16.mxu0 %v8837_v51  ;;  %8023 = vmatpush3.bf16.msra.mxu1 %v8836_v50  ;;  %v8887_v50 = vld [vmem:[#allocation5 + $0x748] sm:$0xff]   ;;  %v1618_v51 = vcombine.high %v1608_v47, %v1608_v47 }
 0x13b   :  { %8024 = vmatprep.subr.bf16.mxu1 %v8838_v52  ;;  %v1616_v52 = vcombine.high %v1594_v48, %v1594_v48 }
 0x13d   :  { %8003 = vmatpush3.bf16.msra.mxu0 %v8839_v53  ;;  %v8888_v53 = vld [vmem:[#allocation5 + $0x7c8] sm:$0xff]  }
 0x13e   :  { %8004 = vmatprep.subr.bf16.mxu0 %v8841_v55  ;;  %8025 = vmatpush3.bf16.msra.mxu1 %v8840_v54  ;;  %v8889_v54 = vld [vmem:[#allocation5 + $0x708] sm:$0xff]  }
 0x13f   :  { %8026 = vmatprep.subr.bf16.mxu1 %v8842_v56  ;;  %v8890_v55 = vld [vmem:[#allocation5 + $0x788] sm:$0xff]   ;;  %v8891_v56 = vld [vmem:[#allocation5 + $0x750] sm:$0xff]  }
 0x141   :  { %8005 = vmatpush3.bf16.msra.mxu0 %v8843_v59  ;;  %v8894_v59 = vld [vmem:[#allocation5 + $0x790] sm:$0xff]  }
 0x142   :  { %8034 = vmatprep.subr.bf16.mxu0 %v8847_v63  ;;  %8027 = vmatpush3.bf16.msra.mxu1 %v8844_v60  ;;  %v8895_v60 = vld [vmem:[#allocation5 + $0x758] sm:$0xff]  }
 0x143   :  { %8056 = vmatprep.subr.bf16.mxu1 %v8848_v2  ;;  %v8898_v63 = vld [vmem:[#allocation5 + $0x798] sm:$0xff]   ;;  %v8901_v2 = vld [vmem:[#allocation5 + $0x720] sm:$0xff]  }
 0x144   :  { %5921 = vmatmul.mubr.bf16.vlgmr.msra.gmra.mrb[20].mxu0 %v1533_v5 }
 0x145   :  { %8035 = vmatpush3.bf16.msra.mxu0 %v8849_v3  ;;  %5961 = vmatmul.mubr.bf16.vlgmr.msra.gmra.mrb[20].mxu1 %v1549_v9 }
 0x146   :  { %8036 = vmatprep.subr.bf16.mxu0 %v8851_v7  ;;  %8057 = vmatpush3.bf16.msra.mxu1 %v8850_v6  ;;  %v8903_v6 = vld [vmem:[#allocation5 + $0x768] sm:$0xff]  }
 0x147   :  { %8058 = vmatprep.subr.bf16.mxu1 %v8852_v10  ;;  %6000 = vmatprep.mubr.bf16.mxu0 %v1608_v47  ;;  %v8902_v10 = vld [vmem:[#allocation5 + $0x7a0] sm:$0xff]   ;;  %v8924_v47 = vld [vmem:[#allocation5 + $0x888] sm:$0xff]  }
 0x148   :  { %6040 = vmatprep.mubr.bf16.mxu1 %v1618_v51  ;;  %v8928_v51 = vld [vmem:[#allocation5 + $0x890] sm:$0xff]  }
 0x149   :  { %8037 = vmatpush3.bf16.msra.mxu0 %v8853_v11 }
 0x14a   :  { %8038 = vmatprep.subr.bf16.mxu0 %v8855_v13  ;;  %8059 = vmatpush3.bf16.msra.mxu1 %v8854_v12 }
 0x14b   :  { %8060 = vmatprep.subr.bf16.mxu1 %v8856_v14  ;;  %v8904_v14 = vld [vmem:[#allocation5 + $0x7e8] sm:$0xff]  }
 0x14d   :  { %8039 = vmatpush3.bf16.msra.mxu0 %v8857_v15 }
 0x14e   :  { %8040 = vmatprep.subr.bf16.mxu0 %v8859_v17  ;;  %8061 = vmatpush3.bf16.msra.mxu1 %v8858_v16  ;;  %v8905_v16 = vld [vmem:[#allocation5 + $0x728] sm:$0xff]  }
 0x14f   :  { %8062 = vmatprep.subr.bf16.mxu1 %v8860_v18  ;;  %v8906_v18 = vld [vmem:[#allocation5 + $0x7a8] sm:$0xff]  }
 0x151   :  { %8041 = vmatpush3.bf16.msra.mxu0 %v8861_v19 }
 0x152   :  { %8042 = vmatprep.subr.bf16.mxu0 %v8863_v21  ;;  %8063 = vmatpush3.bf16.msra.mxu1 %v8862_v20  ;;  %v8907_v20 = vld [vmem:[#allocation5 + $0x770] sm:$0xff]  }
 0x153   :  { %8064 = vmatprep.subr.bf16.mxu1 %v8864_v22  ;;  %v8908_v22 = vld [vmem:[#allocation5 + $0x7f0] sm:$0xff]  }
 0x155   :  { %8043 = vmatpush3.bf16.msra.mxu0 %v8865_v23  ;;  %v8909_v23 = vld [vmem:[#allocation5 + $0x730] sm:$0xff]  }
 0x156   :  { %8044 = vmatprep.subr.bf16.mxu0 %v8867_v25  ;;  %8065 = vmatpush3.bf16.msra.mxu1 %v8866_v24  ;;  %v8910_v24 = vld [vmem:[#allocation5 + $0x7b0] sm:$0xff]   ;;  %v8911_v25 = vld [vmem:[#allocation5 + $0x778] sm:$0xff]  }
 0x157   :  { %8066 = vmatprep.subr.bf16.mxu1 %v8868_v26  ;;  %v8912_v26 = vld [vmem:[#allocation5 + $0x7f8] sm:$0xff]  }
 0x159   :  { %8045 = vmatpush3.bf16.msra.mxu0 %v8869_v27  ;;  %v8913_v27 = vld [vmem:[#allocation5 + $0x738] sm:$0xff]  }
 0x15a   :  { %8046 = vmatprep.subr.bf16.mxu0 %v8871_v29  ;;  %8067 = vmatpush3.bf16.msra.mxu1 %v8870_v28  ;;  %v8915_v28 = vld [vmem:[#allocation2 + $0x1c] ss:$72 sps:$4 sm:$0xff]   ;;  %v8916_v29 = vld [vmem:[#allocation2 + $0xac] ss:$72 sps:$4 sm:$0xff]  }
 0x15b   :  { %8068 = vmatprep.subr.bf16.mxu1 %v8872_v30  ;;  %v1569_v30 = vrot.slane %v8915_v28, %v9619_v37  ;;  %v8955_v28 = vld [vmem:[#allocation5 + $0x900] sm:$0xff]  }
 0x15d   :  { %8047 = vmatpush3.bf16.msra.mxu0 %v8873_v31  ;;  %v8917_v31 = vld [vmem:[#allocation5 + $0x840] sm:$0xff]  }
 0x15e   :  { %8048 = vmatprep.subr.bf16.mxu0 %v8875_v33  ;;  %8069 = vmatpush3.bf16.msra.mxu1 %v8874_v32  ;;  %v8914_v32 = vld [vmem:[#allocation5 + $0x7b8] sm:$0xff]   ;;  %v1583_v33 = vrot.slane %v8916_v29, %v9619_v37 }
 0x15f   :  { %8070 = vmatprep.subr.bf16.mxu1 %v8876_v34  ;;  %v8918_v34 = vld [vmem:[#allocation5 + $0x8c0] sm:$0xff]  }
 0x160   :  { %v1586_v36 = vcombine.low %v1569_v30, %v1583_v33 }
 0x161   :  { %8049 = vmatpush3.bf16.msra.mxu0 %v8877_v35  ;;  %v1587_v35 = vcombine.high %v1569_v30, %v1583_v33 }
 0x162   :  { %8078 = vmatprep.subr.bf16.mxu0 %v8883_v39  ;;  %8071 = vmatpush3.bf16.msra.mxu1 %v8878_v40  ;;  %v1601_v40 = vrot.slane %v1586_v36, %v9619_v37  ;;  %v8959_v36 = vld [vmem:[#allocation5 + $0x908] sm:$0xff]  }
 0x163   :  { %8100 = vmatprep.subr.bf16.mxu1 %v8884_v43  ;;  %v1615_v39 = vrot.slane %v1587_v35, %v9619_v37  ;;  %v8958_v35 = vld [vmem:[#allocation5 + $0x9c8] sm:$0xff]  }
 0x164   :  { %6001 = vmatmul.mubr.bf16.vlgmr.msra.gmra.mrb[24].mxu0 %v1594_v48  ;;  %v1617_v44 = vcombine.high %v1601_v40, %v1601_v40  ;;  %v8925_v48 = vld [vmem:[#allocation5 + $0x850] sm:$0xff]  }
 0x165   :  { %8079 = vmatpush3.bf16.msra.mxu0 %v8885_v46  ;;  %6041 = vmatmul.mubr.bf16.vlgmr.msra.gmra.mrb[24].mxu1 %v1616_v52  ;;  %v1619_v43 = vcombine.high %v1615_v39, %v1615_v39  ;;  %v8923_v46 = vld [vmem:[#allocation5 + $0x808] sm:$0xff]   ;;  %v8929_v52 = vld [vmem:[#allocation5 + $0x858] sm:$0xff]  }
 0x166   :  { %8080 = vmatprep.subr.bf16.mxu0 %v8887_v50  ;;  %8101 = vmatpush3.bf16.msra.mxu1 %v8886_v49  ;;  %v8926_v49 = vld [vmem:[#allocation5 + $0x8d0] sm:$0xff]  }
 0x167   :  { %8102 = vmatprep.subr.bf16.mxu1 %v8888_v53  ;;  %6080 = vmatprep.mubr.bf16.mxu0 %v1615_v39  ;;  %v8927_v50 = vld [vmem:[#allocation5 + $0x810] sm:$0xff]   ;;  %v8930_v53 = vld [vmem:[#allocation5 + $0x8d8] sm:$0xff]  }
 0x168   :  { %6120 = vmatprep.mubr.bf16.mxu1 %v1619_v43  ;;  %v8961_v39 = vld [vmem:[#allocation5 + $0x950] sm:$0xff]   ;;  %v8965_v43 = vld [vmem:[#allocation5 + $0x958] sm:$0xff]  }
 0x169   :  { %8081 = vmatpush3.bf16.msra.mxu0 %v8889_v54  ;;  %v8931_v54 = vld [vmem:[#allocation5 + $0x818] sm:$0xff]  }
 0x16a   :  { %8082 = vmatprep.subr.bf16.mxu0 %v8891_v56  ;;  %8103 = vmatpush3.bf16.msra.mxu1 %v8890_v55  ;;  %v8932_v55 = vld [vmem:[#allocation5 + $0x898] sm:$0xff]   ;;  %v8933_v56 = vld [vmem:[#allocation5 + $0x860] sm:$0xff]  }
 0x16b   :  { %8104 = vmatprep.subr.bf16.mxu1 %v8892_v57 }
 0x16d   :  { %8083 = vmatpush3.bf16.msra.mxu0 %v8893_v58  ;;  %v8934_v58 = vld [vmem:[#allocation5 + $0x8e0] sm:$0xff]  }
 0x16e   :  { %8084 = vmatprep.subr.bf16.mxu0 %v8895_v60  ;;  %8105 = vmatpush3.bf16.msra.mxu1 %v8894_v59  ;;  %v8935_v60 = vld [vmem:[#allocation5 + $0x820] sm:$0xff]  }
 0x16f   :  { %8106 = vmatprep.subr.bf16.mxu1 %v8896_v61 }
 0x171   :  { %8085 = vmatpush3.bf16.msra.mxu0 %v8897_v62 }
 0x172   :  { %8086 = vmatprep.subr.bf16.mxu0 %v8899_v0  ;;  %8107 = vmatpush3.bf16.msra.mxu1 %v8898_v63  ;;  %v8936_v63 = vld [vmem:[#allocation5 + $0x8a0] sm:$0xff]  }
 0x173   :  { %8108 = vmatprep.subr.bf16.mxu1 %v8900_v1  ;;  %v8937_v1 = vld [vmem:[#allocation5 + $0x868] sm:$0xff]  }
 0x175   :  { %8087 = vmatpush3.bf16.msra.mxu0 %v8901_v2 }
 0x176   :  { %8088 = vmatprep.subr.bf16.mxu0 %v8903_v6  ;;  %8109 = vmatpush3.bf16.msra.mxu1 %v8902_v10  ;;  %v8939_v10 = vld [vmem:[#allocation5 + $0x828] sm:$0xff]  }
 0x177   :  { %v7786_v3 = vpop.f32.mrb[0].mxu0  ;;  %8110 = vmatprep.subr.bf16.mxu1 %v8904_v14  ;;  %v8943_v14 = vld [vmem:[#allocation5 + $0x830] sm:$0xff]  }
 0x178   :  { %v7787_v5 = vpop.f32.mrb[1].mxu0  ;;  %v7808_v7 = vpop.f32.mrb[0].mxu1 }
 0x179   :  { %v7788_v8 = vadd.f32 %v7787_v5, %v7786_v3  ;;  %v7789_v9 = vpop.f32.mrb[2].mxu0  ;;  %v7809_v11 = vpop.f32.mrb[1].mxu1  ;;  %8089 = vmatpush3.bf16.msra.mxu0 %v8905_v16  ;;  %v8938_v5 = vld [vmem:[#allocation5 + $0x8e8] sm:$0xff]   ;;  %v8945_v16 = vld [vmem:[#allocation5 + $0x878] sm:$0xff]  }
 0x17a   :  { %v7810_v13 = vadd.f32 %v7809_v11, %v7808_v7  ;;  %v7811_v15 = vpop.f32.mrb[2].mxu1  ;;  %v7790_v17 = vpop.f32.mrb[3].mxu0  ;;  %8090 = vmatprep.subr.bf16.mxu0 %v8907_v20  ;;  %8111 = vmatpush3.bf16.msra.mxu1 %v8906_v18  ;;  %v8940_v11 = vld [vmem:[#allocation5 + $0x8a8] sm:$0xff]   ;;  %v8947_v18 = vld [vmem:[#allocation5 + $0x838] sm:$0xff]  }
 0x17b   :  { %v5523_v12 = vadd.f32 %v7788_v8, %v7175_v4  ;;  %v7812_v19 = vpop.f32.mrb[3].mxu1  ;;  %8112 = vmatprep.subr.bf16.mxu1 %v8908_v22  ;;  %v8944_v15 = vld [vmem:[#allocation5 + $0x8b0] sm:$0xff]   ;;  %v8946_v17 = vld [vmem:[#allocation5 + $0x8f8] sm:$0xff]  }
 0x17c   :  { %v8949_v19 = vld [vmem:[#allocation2 + $0x20] ss:$72 sps:$4 sm:$0xff]   ;;  %v8951_v20 = vld [vmem:[#allocation2 + $0xb0] ss:$72 sps:$4 sm:$0xff]  }
 0x17d   :  { %v9657_v21 = vadd.f32 %v7810_v13, %v5523_v12  ;;  %8091 = vmatpush3.bf16.msra.mxu0 %v8909_v23  ;;  %v8941_v12 = vld [vmem:[#allocation5 + $0x870] sm:$0xff]   ;;  %v8948_v22 = vld [vmem:[#allocation5 + $0x8b8] sm:$0xff]   ;;  %v1630_v23 = vrot.slane %v8949_v19, %v9619_v37  ;;  %v8989_v19 = vld [vmem:[#allocation5 + $0xa00] sm:$0xff]  }
 0x17e   :  { %8092 = vmatprep.subr.bf16.mxu0 %v8911_v25  ;;  %8113 = vmatpush3.bf16.msra.mxu1 %v8910_v24  ;;  %v8942_v13 = vld [vmem:[#allocation5 + $0x8f0] sm:$0xff]   ;;  %v1644_v24 = vrot.slane %v8951_v20, %v9619_v37  ;;  %v8954_v25 = vld [vmem:[#allocation5 + $0x9c0] sm:$0xff]  }
 0x17f   :  { %8114 = vmatprep.subr.bf16.mxu1 %v8912_v26 }
 0x180   :  { %v1653_v26 = vcombine.high %v1630_v23, %v1644_v24 }
 0x181   :  { %8093 = vmatpush3.bf16.msra.mxu0 %v8913_v27  ;;  %v1652_v27 = vcombine.low %v1630_v23, %v1644_v24  ;;  %v8991_v23 = vld [vmem:[#allocation5 + $0xa48] sm:$0xff]  }
 0x182   :  { %8122 = vmatprep.subr.bf16.mxu0 %v8917_v31  ;;  %8115 = vmatpush3.bf16.msra.mxu1 %v8914_v32  ;;  %v1676_v29 = vrot.slane %v1653_v26, %v9619_v37  ;;  %v8956_v31 = vld [vmem:[#allocation5 + $0x980] sm:$0xff]   ;;  %v8957_v32 = vld [vmem:[#allocation5 + $0x948] sm:$0xff]  }
 0x183   :  { %8144 = vmatprep.subr.bf16.mxu1 %v8918_v34  ;;  %v1662_v30 = vrot.slane %v1652_v27, %v9619_v37  ;;  %v8992_v26 = vld [vmem:[#allocation5 + $0xac8] sm:$0xff]  }
 0x184   :  { %6081 = vmatmul.mubr.bf16.vlgmr.msra.gmra.mrb[28].mxu0 %v1601_v40  ;;  %v1686_v33 = vcombine.high %v1676_v29, %v1676_v29  ;;  %v8962_v40 = vld [vmem:[#allocation5 + $0x9d0] sm:$0xff]   ;;  %v8993_v27 = vld [vmem:[#allocation5 + $0xa08] sm:$0xff]  }
 0x185   :  { %8123 = vmatpush3.bf16.msra.mxu0 %v8919_v38  ;;  %6121 = vmatmul.mubr.bf16.vlgmr.msra.gmra.mrb[28].mxu1 %v1617_v44  ;;  %v1684_v34 = vcombine.high %v1662_v30, %v1662_v30  ;;  %v8960_v38 = vld [vmem:[#allocation5 + $0x988] sm:$0xff]   ;;  %v8966_v44 = vld [vmem:[#allocation5 + $0x9d8] sm:$0xff]  }
 0x186   :  { %8124 = vmatprep.subr.bf16.mxu0 %v8921_v42  ;;  %8145 = vmatpush3.bf16.msra.mxu1 %v8920_v41  ;;  %v8963_v41 = vld [vmem:[#allocation5 + $0x910] sm:$0xff]  }
 0x187   :  { %8146 = vmatprep.subr.bf16.mxu1 %v8922_v45  ;;  %6160 = vmatprep.mubr.bf16.mxu0 %v1676_v29  ;;  %v8964_v42 = vld [vmem:[#allocation5 + $0x990] sm:$0xff]   ;;  %v8967_v45 = vld [vmem:[#allocation5 + $0x918] sm:$0xff]  }
 0x188   :  { %6200 = vmatprep.mubr.bf16.mxu1 %v1686_v33  ;;  %v8995_v29 = vld [vmem:[#allocation5 + $0xa50] sm:$0xff]   ;;  %v8999_v33 = vld [vmem:[#allocation5 + $0xa58] sm:$0xff]  }
 0x189   :  { %8125 = vmatpush3.bf16.msra.mxu0 %v8923_v46  ;;  %v8968_v46 = vld [vmem:[#allocation5 + $0x998] sm:$0xff]  }
 0x18a   :  { %8126 = vmatprep.subr.bf16.mxu0 %v8925_v48  ;;  %8147 = vmatpush3.bf16.msra.mxu1 %v8924_v47  ;;  %v8969_v47 = vld [vmem:[#allocation5 + $0x960] sm:$0xff]  }
 0x18b   :  { %8148 = vmatprep.subr.bf16.mxu1 %v8926_v49  ;;  %v8970_v49 = vld [vmem:[#allocation5 + $0x9e0] sm:$0xff]  }
 0x18d   :  { %8127 = vmatpush3.bf16.msra.mxu0 %v8927_v50 }
 0x18e   :  { %8128 = vmatprep.subr.bf16.mxu0 %v8929_v52  ;;  %8149 = vmatpush3.bf16.msra.mxu1 %v8928_v51  ;;  %v8971_v51 = vld [vmem:[#allocation5 + $0x920] sm:$0xff]  }
 0x18f   :  { %8150 = vmatprep.subr.bf16.mxu1 %v8930_v53 }
 0x191   :  { %8129 = vmatpush3.bf16.msra.mxu0 %v8931_v54  ;;  %v8972_v54 = vld [vmem:[#allocation5 + $0x9a0] sm:$0xff]  }
 0x192   :  { %8130 = vmatprep.subr.bf16.mxu0 %v8933_v56  ;;  %8151 = vmatpush3.bf16.msra.mxu1 %v8932_v55  ;;  %v8973_v56 = vld [vmem:[#allocation5 + $0x968] sm:$0xff]  }
 0x193   :  { %8152 = vmatprep.subr.bf16.mxu1 %v8934_v58 }
 0x195   :  { %8131 = vmatpush3.bf16.msra.mxu0 %v8935_v60  ;;  %v8974_v60 = vld [vmem:[#allocation5 + $0x9e8] sm:$0xff]  }
 0x196   :  { %8132 = vmatprep.subr.bf16.mxu0 %v8937_v1  ;;  %8153 = vmatpush3.bf16.msra.mxu1 %v8936_v63  ;;  %v8975_v1 = vld [vmem:[#allocation5 + $0x928] sm:$0xff]  }
 0x197   :  { %v7830_v57 = vpop.f32.mrb[4].mxu0  ;;  %8154 = vmatprep.subr.bf16.mxu1 %v8938_v5  ;;  %v8979_v5 = vld [vmem:[#allocation5 + $0x930] sm:$0xff]  }
 0x198   :  { %v7831_v59 = vpop.f32.mrb[5].mxu0  ;;  %v7852_v61 = vpop.f32.mrb[4].mxu1 }
 0x199   :  { %v7832_v62 = vadd.f32 %v7831_v59, %v7830_v57  ;;  %v7853_v0 = vpop.f32.mrb[5].mxu1  ;;  %v7833_v2 = vpop.f32.mrb[6].mxu0  ;;  %8133 = vmatpush3.bf16.msra.mxu0 %v8939_v10  ;;  %v8986_v10 = vld [vmem:[#allocation2 + $0xb4] ss:$72 sps:$4 sm:$0xff]  }
 0x19a   :  { %v7854_v4 = vadd.f32 %v7853_v0, %v7852_v61  ;;  %v7855_v6 = vpop.f32.mrb[6].mxu1  ;;  %v7834_v7 = vpop.f32.mrb[7].mxu0  ;;  %8134 = vmatprep.subr.bf16.mxu0 %v8941_v12  ;;  %8155 = vmatpush3.bf16.msra.mxu1 %v8940_v11  ;;  %v8976_v2 = vld [vmem:[#allocation5 + $0x9a8] sm:$0xff]   ;;  %v8983_v11 = vld [vmem:[#allocation5 + $0x938] sm:$0xff]  }
 0x19b   :  { %v5603_v3 = vadd.f32 %v7832_v62, %v9657_v21  ;;  %v7856_v8 = vpop.f32.mrb[7].mxu1  ;;  %8156 = vmatprep.subr.bf16.mxu1 %v8942_v13  ;;  %v8953_v21 = vld [vmem:[#allocation5 + $0x940] sm:$0xff]   ;;  %v8980_v6 = vld [vmem:[#allocation5 + $0x9b0] sm:$0xff]   ;;  %v8981_v7 = vld [vmem:[#allocation5 + $0x978] sm:$0xff]   ;;  %v1651_v13 = vrot.slane %v8986_v10, %v9619_v37 }
 0x19c   :  { %v8982_v8 = vld [vmem:[#allocation5 + $0x9f8] sm:$0xff]   ;;  %v9025_v10 = vld [vmem:[#allocation5 + $0xb00] sm:$0xff]  }
 0x19d   :  { %v9664_v9 = vadd.f32 %v7854_v4, %v5603_v3  ;;  %8135 = vmatpush3.bf16.msra.mxu0 %v8943_v14  ;;  %v8977_v3 = vld [vmem:[#allocation5 + $0x970] sm:$0xff]   ;;  %v8987_v14 = vld [vmem:[#allocation5 + $0xa40] sm:$0xff]  }
 0x19e   :  { %8136 = vmatprep.subr.bf16.mxu0 %v8945_v16  ;;  %8157 = vmatpush3.bf16.msra.mxu1 %v8944_v15  ;;  %v8978_v4 = vld [vmem:[#allocation5 + $0x9f0] sm:$0xff]   ;;  %v8984_v15 = vld [vmem:[#allocation5 + $0x9b8] sm:$0xff]  }
 0x19f   :  { %8158 = vmatprep.subr.bf16.mxu1 %v8946_v17 }
 0x1a1   :  { %8137 = vmatpush3.bf16.msra.mxu0 %v8947_v18  ;;  %v8988_v18 = vld [vmem:[#allocation5 + $0xac0] sm:$0xff]  }
 0x1a2   :  { %8166 = vmatprep.subr.bf16.mxu0 %v8953_v21  ;;  %8159 = vmatpush3.bf16.msra.mxu1 %v8948_v22  ;;  %v8990_v22 = vld [vmem:[#allocation5 + $0xa80] sm:$0xff]  }
 0x1a3   :  { %8188 = vmatprep.subr.bf16.mxu1 %v8954_v25 }
 0x1a4   :  { %6161 = vmatmul.mubr.bf16.vlgmr.msra.gmra.mrb[32].mxu0 %v1662_v30  ;;  %v8996_v30 = vld [vmem:[#allocation5 + $0xad0] sm:$0xff]  }
 0x1a5   :  { %8167 = vmatpush3.bf16.msra.mxu0 %v8955_v28  ;;  %6201 = vmatmul.mubr.bf16.vlgmr.msra.gmra.mrb[32].mxu1 %v1684_v34  ;;  %v8994_v28 = vld [vmem:[#allocation5 + $0xa88] sm:$0xff]   ;;  %v9000_v34 = vld [vmem:[#allocation5 + $0xad8] sm:$0xff]  }
 0x1a6   :  { %8168 = vmatprep.subr.bf16.mxu0 %v8957_v32  ;;  %8189 = vmatpush3.bf16.msra.mxu1 %v8956_v31  ;;  %v8997_v31 = vld [vmem:[#allocation5 + $0xa10] sm:$0xff]  }
 0x1a7   :  { %8190 = vmatprep.subr.bf16.mxu1 %v8958_v35  ;;  %v8998_v32 = vld [vmem:[#allocation5 + $0xa90] sm:$0xff]   ;;  %v9001_v35 = vld [vmem:[#allocation5 + $0xa18] sm:$0xff]  }
 0x1a9   :  { %8169 = vmatpush3.bf16.msra.mxu0 %v8959_v36  ;;  %v9002_v36 = vld [vmem:[#allocation5 + $0xa98] sm:$0xff]  }
 0x1aa   :  { %8170 = vmatprep.subr.bf16.mxu0 %v8961_v39  ;;  %8191 = vmatpush3.bf16.msra.mxu1 %v8960_v38  ;;  %v9003_v38 = vld [vmem:[#allocation5 + $0xa60] sm:$0xff]  }
 0x1ab   :  { %8192 = vmatprep.subr.bf16.mxu1 %v8962_v40  ;;  %v9004_v40 = vld [vmem:[#allocation5 + $0xae0] sm:$0xff]  }
 0x1ad   :  { %8171 = vmatpush3.bf16.msra.mxu0 %v8963_v41 }
 0x1ae   :  { %8172 = vmatprep.subr.bf16.mxu0 %v8965_v43  ;;  %8193 = vmatpush3.bf16.msra.mxu1 %v8964_v42  ;;  %v9005_v42 = vld [vmem:[#allocation5 + $0xa20] sm:$0xff]  }
 0x1af   :  { %8194 = vmatprep.subr.bf16.mxu1 %v8966_v44 }
 0x1b1   :  { %8173 = vmatpush3.bf16.msra.mxu0 %v8967_v45  ;;  %v9006_v45 = vld [vmem:[#allocation5 + $0xaa0] sm:$0xff]  }
 0x1b2   :  { %8174 = vmatprep.subr.bf16.mxu0 %v8969_v47  ;;  %8195 = vmatpush3.bf16.msra.mxu1 %v8968_v46  ;;  %v9007_v47 = vld [vmem:[#allocation5 + $0xa68] sm:$0xff]  }
 0x1b3   :  { %8196 = vmatprep.subr.bf16.mxu1 %v8970_v49 }
 0x1b5   :  { %8175 = vmatpush3.bf16.msra.mxu0 %v8971_v51  ;;  %v9008_v51 = vld [vmem:[#allocation5 + $0xae8] sm:$0xff]  }
 0x1b6   :  { %8176 = vmatprep.subr.bf16.mxu0 %v8973_v56  ;;  %8197 = vmatpush3.bf16.msra.mxu1 %v8972_v54  ;;  %v9009_v56 = vld [vmem:[#allocation5 + $0xa28] sm:$0xff]  }
 0x1b7   :  { %v7874_v48 = vpop.f32.mrb[8].mxu0  ;;  %8198 = vmatprep.subr.bf16.mxu1 %v8974_v60  ;;  %v9013_v60 = vld [vmem:[#allocation5 + $0xa30] sm:$0xff]  }
 0x1b8   :  { %v7875_v50 = vpop.f32.mrb[9].mxu0  ;;  %v7896_v52 = vpop.f32.mrb[8].mxu1 }
 0x1b9   :  { %v7876_v53 = vadd.f32 %v7875_v50, %v7874_v48  ;;  %v7897_v55 = vpop.f32.mrb[9].mxu1  ;;  %v7877_v57 = vpop.f32.mrb[10].mxu0  ;;  %8177 = vmatpush3.bf16.msra.mxu0 %v8975_v1  ;;  %v9019_v1 = vld [vmem:[#allocation2 + $0x28] ss:$72 sps:$4 sm:$0xff]  }
 0x1ba   :  { %v7898_v59 = vadd.f32 %v7897_v55, %v7896_v52  ;;  %v7899_v61 = vpop.f32.mrb[10].mxu1  ;;  %v7878_v62 = vpop.f32.mrb[11].mxu0  ;;  %8178 = vmatprep.subr.bf16.mxu0 %v8977_v3  ;;  %8199 = vmatpush3.bf16.msra.mxu1 %v8976_v2  ;;  %v9010_v57 = vld [vmem:[#allocation5 + $0xaa8] sm:$0xff]   ;;  %v9021_v2 = vld [vmem:[#allocation2 + $0xb8] ss:$72 sps:$4 sm:$0xff]  }
 0x1bb   :  { %v5683_v58 = vadd.f32 %v7876_v53, %v9664_v9  ;;  %v7900_v63 = vpop.f32.mrb[11].mxu1  ;;  %8200 = vmatprep.subr.bf16.mxu1 %v8978_v4  ;;  %v8985_v9 = vld [vmem:[#allocation2 + $0x24] ss:$72 sps:$4 sm:$0xff]   ;;  %v9014_v61 = vld [vmem:[#allocation5 + $0xab0] sm:$0xff]   ;;  %v9015_v62 = vld [vmem:[#allocation5 + $0xa78] sm:$0xff]  }
 0x1bc   :  { %v1637_v12 = vrot.slane %v8985_v9, %v9619_v37  ;;  %v9016_v63 = vld [vmem:[#allocation5 + $0xaf8] sm:$0xff]   ;;  %v9023_v3 = vld [vmem:[#allocation5 + $0xb40] sm:$0xff]  }
 0x1bd   :  { %v9671_v0 = vadd.f32 %v7898_v59, %v5683_v58  ;;  %8179 = vmatpush3.bf16.msra.mxu0 %v8979_v5  ;;  %v9011_v58 = vld [vmem:[#allocation5 + $0xa70] sm:$0xff]   ;;  %v9018_v4 = vld [vmem:[#allocation5 + $0xab8] sm:$0xff]   ;;  %v1698_v5 = vrot.slane %v9019_v1, %v9619_v37  ;;  %v9059_v1 = vld [vmem:[#allocation5 + $0xc00] sm:$0xff]  }
 0x1be   :  { %8180 = vmatprep.subr.bf16.mxu0 %v8981_v7  ;;  %8201 = vmatpush3.bf16.msra.mxu1 %v8980_v6  ;;  %v1655_v16 = vcombine.high %v1637_v12, %v1651_v13  ;;  %v1654_v17 = vcombine.low %v1637_v12, %v1651_v13  ;;  %v9012_v59 = vld [vmem:[#allocation5 + $0xaf0] sm:$0xff]   ;;  %v1712_v6 = vrot.slane %v9021_v2, %v9619_v37  ;;  %v9024_v7 = vld [vmem:[#allocation5 + $0xbc0] sm:$0xff]  }
 0x1bf   :  { %8202 = vmatprep.subr.bf16.mxu1 %v8982_v8  ;;  %v9026_v13 = vld [vmem:[#allocation5 + $0xb80] sm:$0xff]  }
 0x1c0   :  { %v1683_v20 = vrot.slane %v1655_v16, %v9619_v37  ;;  %v1669_v21 = vrot.slane %v1654_v17, %v9619_v37  ;;  %v1721_v8 = vcombine.high %v1698_v5, %v1712_v6  ;;  %v1720_v9 = vcombine.low %v1698_v5, %v1712_v6  ;;  %v9028_v17 = vld [vmem:[#allocation5 + $0xbc8] sm:$0xff]  }
 0x1c1   :  { %8181 = vmatpush3.bf16.msra.mxu0 %v8983_v11  ;;  %v9061_v5 = vld [vmem:[#allocation5 + $0xc48] sm:$0xff]  }
 0x1c2   :  { %8210 = vmatprep.subr.bf16.mxu0 %v8987_v14  ;;  %8203 = vmatpush3.bf16.msra.mxu1 %v8984_v15  ;;  %v1687_v24 = vcombine.high %v1683_v20, %v1683_v20  ;;  %v1685_v25 = vcombine.high %v1669_v21, %v1669_v21  ;;  %v1744_v11 = vrot.slane %v1721_v8, %v9619_v37  ;;  %v9027_v14 = vld [vmem:[#allocation5 + $0xb48] sm:$0xff]  }
 0x1c3   :  { %6240 = vmatprep.mubr.bf16.mxu0 %v1683_v20  ;;  %8232 = vmatprep.subr.bf16.mxu1 %v8988_v18  ;;  %v1730_v12 = vrot.slane %v1720_v9, %v9619_v37  ;;  %v9029_v18 = vld [vmem:[#allocation5 + $0xb08] sm:$0xff]   ;;  %v9031_v20 = vld [vmem:[#allocation5 + $0xb50] sm:$0xff]  }
 0x1c4   :  { %6241 = vmatmul.mubr.bf16.vlgmr.msra.gmra.mrb[36].mxu0 %v1669_v21  ;;  %6280 = vmatprep.mubr.bf16.mxu1 %v1687_v24  ;;  %v1754_v15 = vcombine.high %v1744_v11, %v1744_v11  ;;  %v9032_v21 = vld [vmem:[#allocation5 + $0xbd0] sm:$0xff]   ;;  %v9035_v24 = vld [vmem:[#allocation5 + $0xb58] sm:$0xff]   ;;  %v9062_v8 = vld [vmem:[#allocation5 + $0xcc8] sm:$0xff]  }
 0x1c5   :  { %8211 = vmatpush3.bf16.msra.mxu0 %v8989_v19  ;;  %6281 = vmatmul.mubr.bf16.vlgmr.msra.gmra.mrb[36].mxu1 %v1685_v25  ;;  %v1752_v16 = vcombine.high %v1730_v12, %v1730_v12  ;;  %v9030_v19 = vld [vmem:[#allocation5 + $0xb88] sm:$0xff]   ;;  %v9036_v25 = vld [vmem:[#allocation5 + $0xbd8] sm:$0xff]  }
 0x1c6   :  { %8212 = vmatprep.subr.bf16.mxu0 %v8991_v23  ;;  %8233 = vmatpush3.bf16.msra.mxu1 %v8990_v22  ;;  %v9033_v22 = vld [vmem:[#allocation5 + $0xb10] sm:$0xff]   ;;  %v9063_v9 = vld [vmem:[#allocation5 + $0xc08] sm:$0xff]  }
 0x1c7   :  { %8234 = vmatprep.subr.bf16.mxu1 %v8992_v26  ;;  %6320 = vmatprep.mubr.bf16.mxu0 %v1744_v11  ;;  %v9034_v23 = vld [vmem:[#allocation5 + $0xb90] sm:$0xff]   ;;  %v9037_v26 = vld [vmem:[#allocation5 + $0xb18] sm:$0xff]  }
 0x1c8   :  { %6360 = vmatprep.mubr.bf16.mxu1 %v1754_v15  ;;  %v9065_v11 = vld [vmem:[#allocation5 + $0xc50] sm:$0xff]   ;;  %v9069_v15 = vld [vmem:[#allocation5 + $0xc58] sm:$0xff]  }
 0x1c9   :  { %8213 = vmatpush3.bf16.msra.mxu0 %v8993_v27  ;;  %v9038_v27 = vld [vmem:[#allocation5 + $0xb98] sm:$0xff]  }
 0x1ca   :  { %8214 = vmatprep.subr.bf16.mxu0 %v8995_v29  ;;  %8235 = vmatpush3.bf16.msra.mxu1 %v8994_v28  ;;  %v9039_v28 = vld [vmem:[#allocation5 + $0xb60] sm:$0xff]  }
 0x1cb   :  { %8236 = vmatprep.subr.bf16.mxu1 %v8996_v30  ;;  %v9040_v30 = vld [vmem:[#allocation5 + $0xbe0] sm:$0xff]  }
 0x1cd   :  { %8215 = vmatpush3.bf16.msra.mxu0 %v8997_v31 }
 0x1ce   :  { %8216 = vmatprep.subr.bf16.mxu0 %v8999_v33  ;;  %8237 = vmatpush3.bf16.msra.mxu1 %v8998_v32  ;;  %v9041_v32 = vld [vmem:[#allocation5 + $0xb20] sm:$0xff]  }
 0x1cf   :  { %8238 = vmatprep.subr.bf16.mxu1 %v9000_v34 }
 0x1d1   :  { %8217 = vmatpush3.bf16.msra.mxu0 %v9001_v35 }
 0x1d2   :  { %8218 = vmatprep.subr.bf16.mxu0 %v9003_v38  ;;  %8239 = vmatpush3.bf16.msra.mxu1 %v9002_v36  ;;  %v9043_v36 = vld [vmem:[#allocation5 + $0xb68] sm:$0xff]  }
 0x1d3   :  { %8240 = vmatprep.subr.bf16.mxu1 %v9004_v40 }
 0x1d5   :  { %8219 = vmatpush3.bf16.msra.mxu0 %v9005_v42  ;;  %v9042_v42 = vld [vmem:[#allocation5 + $0xba0] sm:$0xff]  }
 0x1d6   :  { %8220 = vmatprep.subr.bf16.mxu0 %v9007_v47  ;;  %8241 = vmatpush3.bf16.msra.mxu1 %v9006_v45  ;;  %v9044_v45 = vld [vmem:[#allocation5 + $0xbe8] sm:$0xff]  }
 0x1d7   :  { %v7918_v39 = vpop.f32.mrb[12].mxu0  ;;  %8242 = vmatprep.subr.bf16.mxu1 %v9008_v51  ;;  %v9045_v47 = vld [vmem:[#allocation5 + $0xb28] sm:$0xff]   ;;  %v9049_v51 = vld [vmem:[#allocation5 + $0xb30] sm:$0xff]  }
 0x1d8   :  { %v7919_v41 = vpop.f32.mrb[13].mxu0  ;;  %v7940_v43 = vpop.f32.mrb[12].mxu1 }
 0x1d9   :  { %v7920_v44 = vadd.f32 %v7919_v41, %v7918_v39  ;;  %v7941_v46 = vpop.f32.mrb[13].mxu1  ;;  %v7921_v48 = vpop.f32.mrb[14].mxu0  ;;  %8221 = vmatpush3.bf16.msra.mxu0 %v9009_v56  ;;  %v9056_v56 = vld [vmem:[#allocation2 + $0xbc] ss:$72 sps:$4 sm:$0xff]  }
 0x1da   :  { %v7942_v50 = vadd.f32 %v7941_v46, %v7940_v43  ;;  %v7943_v52 = vpop.f32.mrb[14].mxu1  ;;  %v7922_v53 = vpop.f32.mrb[15].mxu0  ;;  %8222 = vmatprep.subr.bf16.mxu0 %v9011_v58  ;;  %8243 = vmatpush3.bf16.msra.mxu1 %v9010_v57  ;;  %v9047_v48 = vld [vmem:[#allocation5 + $0xb70] sm:$0xff]   ;;  %v9053_v57 = vld [vmem:[#allocation5 + $0xb38] sm:$0xff]  }
 0x1db   :  { %v5763_v49 = vadd.f32 %v7920_v44, %v9671_v0  ;;  %v7944_v54 = vpop.f32.mrb[15].mxu1  ;;  %v9017_v0 = vld [vmem:[#allocation5 + $0xa38] sm:$0xff]   ;;  %8244 = vmatprep.subr.bf16.mxu1 %v9012_v59  ;;  %v9050_v53 = vld [vmem:[#allocation5 + $0xbb0] sm:$0xff]   ;;  %v1719_v59 = vrot.slane %v9056_v56, %v9619_v37  ;;  %v9095_v56 = vld [vmem:[#allocation5 + $0xd00] sm:$0xff]  }
 0x1dc   :  { %v9051_v52 = vld [vmem:[#allocation5 + $0xb78] sm:$0xff]  }
 0x1dd   :  { %v9678_v55 = vadd.f32 %v7942_v50, %v5763_v49  ;;  %8223 = vmatpush3.bf16.msra.mxu0 %v9013_v60  ;;  %v9046_v49 = vld [vmem:[#allocation5 + $0xba8] sm:$0xff]   ;;  %v9048_v50 = vld [vmem:[#allocation5 + $0xbf0] sm:$0xff]   ;;  %v9052_v54 = vld [vmem:[#allocation5 + $0xbf8] sm:$0xff]  }
 0x1de   :  { %8224 = vmatprep.subr.bf16.mxu0 %v9015_v62  ;;  %8245 = vmatpush3.bf16.msra.mxu1 %v9014_v61  ;;  %v9057_v60 = vld [vmem:[#allocation5 + $0xc40] sm:$0xff]   ;;  %v9054_v61 = vld [vmem:[#allocation5 + $0xbb8] sm:$0xff]  }
 0x1df   :  { %8246 = vmatprep.subr.bf16.mxu1 %v9016_v63 }
 0x1e1   :  { %8225 = vmatpush3.bf16.msra.mxu0 %v9017_v0  ;;  %v9058_v0 = vld [vmem:[#allocation5 + $0xcc0] sm:$0xff]  }
 0x1e2   :  { %8254 = vmatprep.subr.bf16.mxu0 %v9023_v3  ;;  %8247 = vmatpush3.bf16.msra.mxu1 %v9018_v4  ;;  %v9060_v4 = vld [vmem:[#allocation5 + $0xc80] sm:$0xff]  }
 0x1e3   :  { %8276 = vmatprep.subr.bf16.mxu1 %v9024_v7 }
 0x1e4   :  { %6321 = vmatmul.mubr.bf16.vlgmr.msra.gmra.mrb[40].mxu0 %v1730_v12  ;;  %v9066_v12 = vld [vmem:[#allocation5 + $0xcd0] sm:$0xff]  }
 0x1e5   :  { %8255 = vmatpush3.bf16.msra.mxu0 %v9025_v10  ;;  %6361 = vmatmul.mubr.bf16.vlgmr.msra.gmra.mrb[40].mxu1 %v1752_v16  ;;  %v9064_v10 = vld [vmem:[#allocation5 + $0xc88] sm:$0xff]   ;;  %v9070_v16 = vld [vmem:[#allocation5 + $0xcd8] sm:$0xff]  }
 0x1e6   :  { %8256 = vmatprep.subr.bf16.mxu0 %v9027_v14  ;;  %8277 = vmatpush3.bf16.msra.mxu1 %v9026_v13  ;;  %v9067_v13 = vld [vmem:[#allocation5 + $0xc10] sm:$0xff]  }
 0x1e7   :  { %8278 = vmatprep.subr.bf16.mxu1 %v9028_v17  ;;  %v9068_v14 = vld [vmem:[#allocation5 + $0xc90] sm:$0xff]   ;;  %v9071_v17 = vld [vmem:[#allocation5 + $0xc18] sm:$0xff]  }
 0x1e9   :  { %8257 = vmatpush3.bf16.msra.mxu0 %v9029_v18  ;;  %v9072_v18 = vld [vmem:[#allocation5 + $0xc98] sm:$0xff]  }
 0x1ea   :  { %8258 = vmatprep.subr.bf16.mxu0 %v9031_v20  ;;  %8279 = vmatpush3.bf16.msra.mxu1 %v9030_v19  ;;  %v9073_v20 = vld [vmem:[#allocation5 + $0xc60] sm:$0xff]  }
 0x1eb   :  { %8280 = vmatprep.subr.bf16.mxu1 %v9032_v21 }
 0x1ed   :  { %8259 = vmatpush3.bf16.msra.mxu0 %v9033_v22  ;;  %v9074_v22 = vld [vmem:[#allocation5 + $0xce0] sm:$0xff]  }
 0x1ee   :  { %8260 = vmatprep.subr.bf16.mxu0 %v9035_v24  ;;  %8281 = vmatpush3.bf16.msra.mxu1 %v9034_v23 }
 0x1ef   :  { %8282 = vmatprep.subr.bf16.mxu1 %v9036_v25  ;;  %v9075_v25 = vld [vmem:[#allocation5 + $0xc20] sm:$0xff]  }
 0x1f1   :  { %8261 = vmatpush3.bf16.msra.mxu0 %v9037_v26 }
 0x1f2   :  { %8262 = vmatprep.subr.bf16.mxu0 %v9039_v28  ;;  %8283 = vmatpush3.bf16.msra.mxu1 %v9038_v27  ;;  %v9076_v27 = vld [vmem:[#allocation5 + $0xca0] sm:$0xff]  }
 0x1f3   :  { %8284 = vmatprep.subr.bf16.mxu1 %v9040_v30 }
 0x1f5   :  { %8263 = vmatpush3.bf16.msra.mxu0 %v9041_v32 }
 0x1f6   :  { %8264 = vmatprep.subr.bf16.mxu0 %v9043_v36  ;;  %8285 = vmatpush3.bf16.msra.mxu1 %v9042_v42  ;;  %v9079_v36 = vld [vmem:[#allocation5 + $0xc28] sm:$0xff]   ;;  %v9083_v42 = vld [vmem:[#allocation5 + $0xc30] sm:$0xff]  }
 0x1f7   :  { %v7962_v29 = vpop.f32.mrb[16].mxu0  ;;  %8286 = vmatprep.subr.bf16.mxu1 %v9044_v45  ;;  %v9086_v45 = vld [vmem:[#allocation5 + $0xcf8] sm:$0xff]  }
 0x1f8   :  { %v7963_v31 = vpop.f32.mrb[17].mxu0  ;;  %v7984_v33 = vpop.f32.mrb[16].mxu1 }
 0x1f9   :  { %v7964_v34 = vadd.f32 %v7963_v31, %v7962_v29  ;;  %v7985_v35 = vpop.f32.mrb[17].mxu1  ;;  %v7965_v40 = vpop.f32.mrb[18].mxu0  ;;  %8265 = vmatpush3.bf16.msra.mxu0 %v9045_v47  ;;  %v9077_v31 = vld [vmem:[#allocation5 + $0xc68] sm:$0xff]   ;;  %v9089_v47 = vld [vmem:[#allocation2 + $0x30] ss:$72 sps:$4 sm:$0xff]  }
 0x1fa   :  { %v7986_v39 = vadd.f32 %v7985_v35, %v7984_v33  ;;  %v7987_v41 = vpop.f32.mrb[18].mxu1  ;;  %v7966_v43 = vpop.f32.mrb[19].mxu0  ;;  %8266 = vmatprep.subr.bf16.mxu0 %v9047_v48  ;;  %8287 = vmatpush3.bf16.msra.mxu1 %v9046_v49  ;;  %v9081_v40 = vld [vmem:[#allocation5 + $0xc70] sm:$0xff]   ;;  %v9091_v48 = vld [vmem:[#allocation2 + $0xc0] ss:$72 sps:$4 sm:$0xff]  }
 0x1fb   :  { %v5843_v38 = vadd.f32 %v7964_v34, %v9678_v55  ;;  %v7988_v46 = vpop.f32.mrb[19].mxu1  ;;  %8288 = vmatprep.subr.bf16.mxu1 %v9048_v50  ;;  %v9055_v55 = vld [vmem:[#allocation2 + $0x2c] ss:$72 sps:$4 sm:$0xff]   ;;  %v9093_v49 = vld [vmem:[#allocation5 + $0xd40] sm:$0xff]   ;;  %v9088_v50 = vld [vmem:[#allocation5 + $0xcb8] sm:$0xff]  }
 0x1fc   :  { %v1705_v58 = vrot.slane %v9055_v55, %v9619_v37  ;;  %v9078_v34 = vld [vmem:[#allocation5 + $0xce8] sm:$0xff]   ;;  %v9082_v41 = vld [vmem:[#allocation5 + $0xcf0] sm:$0xff]   ;;  %v9087_v46 = vld [vmem:[#allocation5 + $0xc38] sm:$0xff]  }
 0x1fd   :  { %v9685_v44 = vadd.f32 %v7986_v39, %v5843_v38  ;;  %8267 = vmatpush3.bf16.msra.mxu0 %v9049_v51  ;;  %v9080_v39 = vld [vmem:[#allocation5 + $0xca8] sm:$0xff]   ;;  %v9084_v43 = vld [vmem:[#allocation5 + $0xcb0] sm:$0xff]   ;;  %v1766_v51 = vrot.slane %v9089_v47, %v9619_v37  ;;  %v9129_v47 = vld [vmem:[#allocation5 + $0xe00] sm:$0xff]  }
 0x1fe   :  { %8268 = vmatprep.subr.bf16.mxu0 %v9051_v52  ;;  %8289 = vmatpush3.bf16.msra.mxu1 %v9050_v53  ;;  %v1723_v62 = vcombine.high %v1705_v58, %v1719_v59  ;;  %v1722_v63 = vcombine.low %v1705_v58, %v1719_v59  ;;  %v1780_v52 = vrot.slane %v9091_v48, %v9619_v37  ;;  %v9094_v53 = vld [vmem:[#allocation5 + $0xdc0] sm:$0xff]  }
 0x1ff   :  { %8290 = vmatprep.subr.bf16.mxu1 %v9052_v54  ;;  %v9096_v59 = vld [vmem:[#allocation5 + $0xd80] sm:$0xff]  }
 0x200   :  { %v1751_v2 = vrot.slane %v1723_v62, %v9619_v37  ;;  %v1737_v3 = vrot.slane %v1722_v63, %v9619_v37  ;;  %v1789_v54 = vcombine.high %v1766_v51, %v1780_v52  ;;  %v1788_v55 = vcombine.low %v1766_v51, %v1780_v52  ;;  %v9098_v63 = vld [vmem:[#allocation5 + $0xdc8] sm:$0xff]  }
 0x201   :  { %8269 = vmatpush3.bf16.msra.mxu0 %v9053_v57  ;;  %v9131_v51 = vld [vmem:[#allocation5 + $0xe48] sm:$0xff]  }
 0x202   :  { %8298 = vmatprep.subr.bf16.mxu0 %v9057_v60  ;;  %8291 = vmatpush3.bf16.msra.mxu1 %v9054_v61  ;;  %v1755_v6 = vcombine.high %v1751_v2, %v1751_v2  ;;  %v1753_v7 = vcombine.high %v1737_v3, %v1737_v3  ;;  %v1812_v57 = vrot.slane %v1789_v54, %v9619_v37  ;;  %v9097_v60 = vld [vmem:[#allocation5 + $0xd48] sm:$0xff]  }
 0x203   :  { %6400 = vmatprep.mubr.bf16.mxu0 %v1751_v2  ;;  %8320 = vmatprep.subr.bf16.mxu1 %v9058_v0  ;;  %v1798_v58 = vrot.slane %v1788_v55, %v9619_v37  ;;  %v9099_v0 = vld [vmem:[#allocation5 + $0xd08] sm:$0xff]   ;;  %v9101_v2 = vld [vmem:[#allocation5 + $0xd50] sm:$0xff]  }
 0x204   :  { %6401 = vmatmul.mubr.bf16.vlgmr.msra.gmra.mrb[44].mxu0 %v1737_v3  ;;  %6440 = vmatprep.mubr.bf16.mxu1 %v1755_v6  ;;  %v1822_v61 = vcombine.high %v1812_v57, %v1812_v57  ;;  %v9102_v3 = vld [vmem:[#allocation5 + $0xdd0] sm:$0xff]   ;;  %v9105_v6 = vld [vmem:[#allocation5 + $0xd58] sm:$0xff]   ;;  %v9132_v54 = vld [vmem:[#allocation5 + $0xec8] sm:$0xff]  }
 0x205   :  { %8299 = vmatpush3.bf16.msra.mxu0 %v9059_v1  ;;  %6441 = vmatmul.mubr.bf16.vlgmr.msra.gmra.mrb[44].mxu1 %v1753_v7  ;;  %v1820_v62 = vcombine.high %v1798_v58, %v1798_v58  ;;  %v9100_v1 = vld [vmem:[#allocation5 + $0xd88] sm:$0xff]   ;;  %v9106_v7 = vld [vmem:[#allocation5 + $0xdd8] sm:$0xff]  }
 0x206   :  { %8300 = vmatprep.subr.bf16.mxu0 %v9061_v5  ;;  %8321 = vmatpush3.bf16.msra.mxu1 %v9060_v4  ;;  %v9103_v4 = vld [vmem:[#allocation5 + $0xd10] sm:$0xff]   ;;  %v9133_v55 = vld [vmem:[#allocation5 + $0xe08] sm:$0xff]  }
 0x207   :  { %8322 = vmatprep.subr.bf16.mxu1 %v9062_v8  ;;  %6480 = vmatprep.mubr.bf16.mxu0 %v1812_v57  ;;  %v9104_v5 = vld [vmem:[#allocation5 + $0xd90] sm:$0xff]   ;;  %v9107_v8 = vld [vmem:[#allocation5 + $0xd18] sm:$0xff]  }
 0x208   :  { %6520 = vmatprep.mubr.bf16.mxu1 %v1822_v61  ;;  %v9135_v57 = vld [vmem:[#allocation5 + $0xe50] sm:$0xff]   ;;  %v9139_v61 = vld [vmem:[#allocation5 + $0xe58] sm:$0xff]  }
 0x209   :  { %8301 = vmatpush3.bf16.msra.mxu0 %v9063_v9  ;;  %v9108_v9 = vld [vmem:[#allocation5 + $0xd98] sm:$0xff]  }
 0x20a   :  { %8302 = vmatprep.subr.bf16.mxu0 %v9065_v11  ;;  %8323 = vmatpush3.bf16.msra.mxu1 %v9064_v10  ;;  %v9109_v11 = vld [vmem:[#allocation5 + $0xd60] sm:$0xff]  }
 0x20b   :  { %8324 = vmatprep.subr.bf16.mxu1 %v9066_v12 }
 0x20d   :  { %8303 = vmatpush3.bf16.msra.mxu0 %v9067_v13  ;;  %v9110_v13 = vld [vmem:[#allocation5 + $0xde0] sm:$0xff]  }
 0x20e   :  { %8304 = vmatprep.subr.bf16.mxu0 %v9069_v15  ;;  %8325 = vmatpush3.bf16.msra.mxu1 %v9068_v14 }
 0x20f   :  { %8326 = vmatprep.subr.bf16.mxu1 %v9070_v16  ;;  %v9111_v16 = vld [vmem:[#allocation5 + $0xd20] sm:$0xff]  }
 0x211   :  { %8305 = vmatpush3.bf16.msra.mxu0 %v9071_v17 }
 0x212   :  { %8306 = vmatprep.subr.bf16.mxu0 %v9073_v20  ;;  %8327 = vmatpush3.bf16.msra.mxu1 %v9072_v18  ;;  %v9112_v18 = vld [vmem:[#allocation5 + $0xda0] sm:$0xff]  }
 0x213   :  { %8328 = vmatprep.subr.bf16.mxu1 %v9074_v22  ;;  %v9113_v22 = vld [vmem:[#allocation5 + $0xd68] sm:$0xff]  }
 0x215   :  { %8307 = vmatpush3.bf16.msra.mxu0 %v9075_v25  ;;  %v9114_v25 = vld [vmem:[#allocation5 + $0xde8] sm:$0xff]  }
 0x216   :  { %8308 = vmatprep.subr.bf16.mxu0 %v9077_v31  ;;  %8329 = vmatpush3.bf16.msra.mxu1 %v9076_v27  ;;  %v9115_v27 = vld [vmem:[#allocation5 + $0xd28] sm:$0xff]   ;;  %v9118_v31 = vld [vmem:[#allocation5 + $0xdf0] sm:$0xff]  }
 0x217   :  { %v8006_v19 = vpop.f32.mrb[20].mxu0  ;;  %8330 = vmatprep.subr.bf16.mxu1 %v9078_v34  ;;  %v9121_v34 = vld [vmem:[#allocation5 + $0xd78] sm:$0xff]  }
 0x218   :  { %v8007_v21 = vpop.f32.mrb[21].mxu0  ;;  %v8028_v23 = vpop.f32.mrb[20].mxu1 }
 0x219   :  { %v8008_v24 = vadd.f32 %v8007_v21, %v8006_v19  ;;  %v8029_v26 = vpop.f32.mrb[21].mxu1  ;;  %v8009_v30 = vpop.f32.mrb[22].mxu0  ;;  %8309 = vmatpush3.bf16.msra.mxu0 %v9079_v36  ;;  %v9125_v36 = vld [vmem:[#allocation2 + $0x34] ss:$72 sps:$4 sm:$0xff]  }
 0x21a   :  { %v8030_v29 = vadd.f32 %v8029_v26, %v8028_v23  ;;  %v8031_v32 = vpop.f32.mrb[22].mxu1  ;;  %v8010_v35 = vpop.f32.mrb[23].mxu0  ;;  %8310 = vmatprep.subr.bf16.mxu0 %v9081_v40  ;;  %8331 = vmatpush3.bf16.msra.mxu1 %v9080_v39  ;;  %v9117_v30 = vld [vmem:[#allocation5 + $0xd70] sm:$0xff]   ;;  %v9123_v39 = vld [vmem:[#allocation5 + $0xd38] sm:$0xff]   ;;  %v1773_v40 = vrot.slane %v9125_v36, %v9619_v37 }
 0x21b   :  { %v5923_v28 = vadd.f32 %v8008_v24, %v9685_v44  ;;  %v8032_v38 = vpop.f32.mrb[23].mxu1  ;;  %v9085_v44 = vld [vmem:[#allocation5 + $0xc78] sm:$0xff]   ;;  %8332 = vmatprep.subr.bf16.mxu1 %v9082_v41  ;;  %v9119_v32 = vld [vmem:[#allocation5 + $0xd30] sm:$0xff]  }
 0x21c   :  { %v9122_v35 = vld [vmem:[#allocation5 + $0xdf8] sm:$0xff]   ;;  %v9126_v38 = vld [vmem:[#allocation2 + $0xc4] ss:$72 sps:$4 sm:$0xff]  }
 0x21d   :  { %v9692_v33 = vadd.f32 %v8030_v29, %v5923_v28  ;;  %8311 = vmatpush3.bf16.msra.mxu0 %v9083_v42  ;;  %v9116_v29 = vld [vmem:[#allocation5 + $0xda8] sm:$0xff]   ;;  %v1787_v41 = vrot.slane %v9126_v38, %v9619_v37  ;;  %v9127_v42 = vld [vmem:[#allocation5 + $0xe40] sm:$0xff]  }
 0x21e   :  { %8312 = vmatprep.subr.bf16.mxu0 %v9085_v44  ;;  %8333 = vmatpush3.bf16.msra.mxu1 %v9084_v43  ;;  %v9124_v43 = vld [vmem:[#allocation5 + $0xdb8] sm:$0xff]   ;;  %v9165_v38 = vld [vmem:[#allocation5 + $0xf00] sm:$0xff]  }
 0x21f   :  { %8334 = vmatprep.subr.bf16.mxu1 %v9086_v45  ;;  %v1791_v44 = vcombine.high %v1773_v40, %v1787_v41  ;;  %v1790_v45 = vcombine.low %v1773_v40, %v1787_v41  ;;  %v9166_v41 = vld [vmem:[#allocation5 + $0xf80] sm:$0xff]  }
 0x221   :  { %8313 = vmatpush3.bf16.msra.mxu0 %v9087_v46  ;;  %v9128_v46 = vld [vmem:[#allocation5 + $0xec0] sm:$0xff]   ;;  %v1819_v48 = vrot.slane %v1791_v44, %v9619_v37 }
 0x222   :  { %8342 = vmatprep.subr.bf16.mxu0 %v9093_v49  ;;  %8335 = vmatpush3.bf16.msra.mxu1 %v9088_v50  ;;  %v1805_v49 = vrot.slane %v1790_v45, %v9619_v37  ;;  %v9130_v50 = vld [vmem:[#allocation5 + $0xe80] sm:$0xff]   ;;  %v9168_v45 = vld [vmem:[#allocation5 + $0xfc8] sm:$0xff]  }
 0x223   :  { %8364 = vmatprep.subr.bf16.mxu1 %v9094_v53  ;;  %v1823_v52 = vcombine.high %v1819_v48, %v1819_v48 }
 0x224   :  { %6481 = vmatmul.mubr.bf16.vlgmr.msra.gmra.mrb[48].mxu0 %v1798_v58  ;;  %v1821_v53 = vcombine.high %v1805_v49, %v1805_v49  ;;  %v9136_v58 = vld [vmem:[#allocation5 + $0xed0] sm:$0xff]  }
 0x225   :  { %8343 = vmatpush3.bf16.msra.mxu0 %v9095_v56  ;;  %6521 = vmatmul.mubr.bf16.vlgmr.msra.gmra.mrb[48].mxu1 %v1820_v62  ;;  %v9134_v56 = vld [vmem:[#allocation5 + $0xe88] sm:$0xff]   ;;  %v9140_v62 = vld [vmem:[#allocation5 + $0xed8] sm:$0xff]  }
 0x226   :  { %8344 = vmatprep.subr.bf16.mxu0 %v9097_v60  ;;  %8365 = vmatpush3.bf16.msra.mxu1 %v9096_v59  ;;  %v9137_v59 = vld [vmem:[#allocation5 + $0xe10] sm:$0xff]  }
 0x227   :  { %8366 = vmatprep.subr.bf16.mxu1 %v9098_v63  ;;  %6560 = vmatprep.mubr.bf16.mxu0 %v1819_v48  ;;  %v9138_v60 = vld [vmem:[#allocation5 + $0xe90] sm:$0xff]   ;;  %v9141_v63 = vld [vmem:[#allocation5 + $0xe18] sm:$0xff]  }
 0x228   :  { %6600 = vmatprep.mubr.bf16.mxu1 %v1823_v52  ;;  %v9171_v48 = vld [vmem:[#allocation5 + $0xf50] sm:$0xff]   ;;  %v9175_v52 = vld [vmem:[#allocation5 + $0xf58] sm:$0xff]  }
 0x229   :  { %8345 = vmatpush3.bf16.msra.mxu0 %v9099_v0  ;;  %v9142_v0 = vld [vmem:[#allocation5 + $0xe98] sm:$0xff]  }
 0x22a   :  { %8346 = vmatprep.subr.bf16.mxu0 %v9101_v2  ;;  %8367 = vmatpush3.bf16.msra.mxu1 %v9100_v1  ;;  %v9143_v1 = vld [vmem:[#allocation5 + $0xe60] sm:$0xff]  }
 0x22b   :  { %8368 = vmatprep.subr.bf16.mxu1 %v9102_v3  ;;  %v9144_v3 = vld [vmem:[#allocation5 + $0xee0] sm:$0xff]  }
 0x22d   :  { %8347 = vmatpush3.bf16.msra.mxu0 %v9103_v4 }
 0x22e   :  { %8348 = vmatprep.subr.bf16.mxu0 %v9105_v6  ;;  %8369 = vmatpush3.bf16.msra.mxu1 %v9104_v5  ;;  %v9145_v5 = vld [vmem:[#allocation5 + $0xe20] sm:$0xff]  }
 0x22f   :  { %8370 = vmatprep.subr.bf16.mxu1 %v9106_v7 }
 0x231   :  { %8349 = vmatpush3.bf16.msra.mxu0 %v9107_v8  ;;  %v9146_v8 = vld [vmem:[#allocation5 + $0xea0] sm:$0xff]  }
 0x232   :  { %8350 = vmatprep.subr.bf16.mxu0 %v9109_v11  ;;  %8371 = vmatpush3.bf16.msra.mxu1 %v9108_v9 }
 0x233   :  { %8372 = vmatprep.subr.bf16.mxu1 %v9110_v13 }
 0x235   :  { %8351 = vmatpush3.bf16.msra.mxu0 %v9111_v16 }
 0x236   :  { %8352 = vmatprep.subr.bf16.mxu0 %v9113_v22  ;;  %8373 = vmatpush3.bf16.msra.mxu1 %v9112_v18  ;;  %v9152_v22 = vld [vmem:[#allocation5 + $0xef0] sm:$0xff]  }
 0x237   :  { %v8050_v10 = vpop.f32.mrb[24].mxu0  ;;  %8374 = vmatprep.subr.bf16.mxu1 %v9114_v25  ;;  %v9155_v25 = vld [vmem:[#allocation5 + $0xe78] sm:$0xff]  }
 0x238   :  { %v8051_v12 = vpop.f32.mrb[25].mxu0  ;;  %v8072_v14 = vpop.f32.mrb[24].mxu1 }
 0x239   :  { %v8052_v15 = vadd.f32 %v8051_v12, %v8050_v10  ;;  %v8073_v17 = vpop.f32.mrb[25].mxu1  ;;  %v8053_v21 = vpop.f32.mrb[26].mxu0  ;;  %8353 = vmatpush3.bf16.msra.mxu0 %v9115_v27  ;;  %v9147_v10 = vld [vmem:[#allocation5 + $0xe68] sm:$0xff]   ;;  %v9157_v27 = vld [vmem:[#allocation5 + $0xe38] sm:$0xff]  }
 0x23a   :  { %v8074_v20 = vadd.f32 %v8073_v17, %v8072_v14  ;;  %v8075_v23 = vpop.f32.mrb[26].mxu1  ;;  %v8054_v26 = vpop.f32.mrb[27].mxu0  ;;  %8354 = vmatprep.subr.bf16.mxu0 %v9117_v30  ;;  %8375 = vmatpush3.bf16.msra.mxu1 %v9116_v29  ;;  %v9148_v14 = vld [vmem:[#allocation5 + $0xee8] sm:$0xff]   ;;  %v9151_v21 = vld [vmem:[#allocation5 + $0xe70] sm:$0xff]   ;;  %v9163_v30 = vld [vmem:[#allocation5 + $0xf40] sm:$0xff]  }
 0x23b   :  { %v6003_v19 = vadd.f32 %v8052_v15, %v9692_v33  ;;  %v8076_v28 = vpop.f32.mrb[27].mxu1  ;;  %v9120_v33 = vld [vmem:[#allocation5 + $0xdb0] sm:$0xff]   ;;  %8376 = vmatprep.subr.bf16.mxu1 %v9118_v31  ;;  %v9156_v26 = vld [vmem:[#allocation5 + $0xef8] sm:$0xff]  }
 0x23c   :  { %v9153_v23 = vld [vmem:[#allocation5 + $0xe30] sm:$0xff]   ;;  %v9159_v28 = vld [vmem:[#allocation2 + $0x38] ss:$72 sps:$4 sm:$0xff]  }
 0x23d   :  { %v9699_v24 = vadd.f32 %v8074_v20, %v6003_v19  ;;  %8355 = vmatpush3.bf16.msra.mxu0 %v9119_v32  ;;  %v9149_v19 = vld [vmem:[#allocation5 + $0xe28] sm:$0xff]   ;;  %v9158_v31 = vld [vmem:[#allocation5 + $0xeb8] sm:$0xff]   ;;  %v1834_v32 = vrot.slane %v9159_v28, %v9619_v37  ;;  %v9199_v28 = vld [vmem:[#allocation5 + $0x1000] sm:$0xff]  }
 0x23e   :  { %8356 = vmatprep.subr.bf16.mxu0 %v9121_v34  ;;  %8377 = vmatpush3.bf16.msra.mxu1 %v9120_v33  ;;  %v9150_v20 = vld [vmem:[#allocation5 + $0xea8] sm:$0xff]   ;;  %v9164_v34 = vld [vmem:[#allocation5 + $0xfc0] sm:$0xff]  }
 0x23f   :  { %8378 = vmatprep.subr.bf16.mxu1 %v9122_v35  ;;  %v9161_v29 = vld [vmem:[#allocation2 + $0xc8] ss:$72 sps:$4 sm:$0xff]  }
 0x240   :  { %v1848_v33 = vrot.slane %v9161_v29, %v9619_v37 }
 0x241   :  { %8357 = vmatpush3.bf16.msra.mxu0 %v9123_v39 }
 0x242   :  { %8386 = vmatprep.subr.bf16.mxu0 %v9127_v42  ;;  %8379 = vmatpush3.bf16.msra.mxu1 %v9124_v43  ;;  %v1857_v35 = vcombine.high %v1834_v32, %v1848_v33  ;;  %v1856_v36 = vcombine.low %v1834_v32, %v1848_v33  ;;  %v9167_v42 = vld [vmem:[#allocation5 + $0xf48] sm:$0xff]  }
 0x243   :  { %8408 = vmatprep.subr.bf16.mxu1 %v9128_v46  ;;  %v9169_v46 = vld [vmem:[#allocation5 + $0xf08] sm:$0xff]  }
 0x244   :  { %6561 = vmatmul.mubr.bf16.vlgmr.msra.gmra.mrb[52].mxu0 %v1805_v49  ;;  %v1880_v39 = vrot.slane %v1857_v35, %v9619_v37  ;;  %v1866_v40 = vrot.slane %v1856_v36, %v9619_v37  ;;  %v9172_v49 = vld [vmem:[#allocation5 + $0xfd0] sm:$0xff]   ;;  %v9201_v32 = vld [vmem:[#allocation5 + $0x1048] sm:$0xff]  }
 0x245   :  { %8387 = vmatpush3.bf16.msra.mxu0 %v9129_v47  ;;  %6601 = vmatmul.mubr.bf16.vlgmr.msra.gmra.mrb[52].mxu1 %v1821_v53  ;;  %v9170_v47 = vld [vmem:[#allocation5 + $0xf88] sm:$0xff]   ;;  %v9176_v53 = vld [vmem:[#allocation5 + $0xfd8] sm:$0xff]  }
 0x246   :  { %8388 = vmatprep.subr.bf16.mxu0 %v9131_v51  ;;  %8409 = vmatpush3.bf16.msra.mxu1 %v9130_v50  ;;  %v1890_v43 = vcombine.high %v1880_v39, %v1880_v39  ;;  %v1888_v44 = vcombine.high %v1866_v40, %v1866_v40  ;;  %v9173_v50 = vld [vmem:[#allocation5 + $0xf10] sm:$0xff]   ;;  %v9202_v35 = vld [vmem:[#allocation5 + $0x10c8] sm:$0xff]  }
 0x247   :  { %8410 = vmatprep.subr.bf16.mxu1 %v9132_v54  ;;  %6640 = vmatprep.mubr.bf16.mxu0 %v1880_v39  ;;  %v9174_v51 = vld [vmem:[#allocation5 + $0xf90] sm:$0xff]   ;;  %v9177_v54 = vld [vmem:[#allocation5 + $0xf18] sm:$0xff]   ;;  %v9203_v36 = vld [vmem:[#allocation5 + $0x1008] sm:$0xff]  }
 0x248   :  { %6680 = vmatprep.mubr.bf16.mxu1 %v1890_v43  ;;  %v9205_v39 = vld [vmem:[#allocation5 + $0x1050] sm:$0xff]   ;;  %v9209_v43 = vld [vmem:[#allocation5 + $0x1058] sm:$0xff]  }
 0x249   :  { %8389 = vmatpush3.bf16.msra.mxu0 %v9133_v55  ;;  %v9178_v55 = vld [vmem:[#allocation5 + $0xf98] sm:$0xff]  }
 0x24a   :  { %8390 = vmatprep.subr.bf16.mxu0 %v9135_v57  ;;  %8411 = vmatpush3.bf16.msra.mxu1 %v9134_v56  ;;  %v9179_v56 = vld [vmem:[#allocation5 + $0xf60] sm:$0xff]  }
 0x24b   :  { %8412 = vmatprep.subr.bf16.mxu1 %v9136_v58  ;;  %v9180_v58 = vld [vmem:[#allocation5 + $0xfe0] sm:$0xff]  }
 0x24d   :  { %8391 = vmatpush3.bf16.msra.mxu0 %v9137_v59 }
 0x24e   :  { %8392 = vmatprep.subr.bf16.mxu0 %v9139_v61  ;;  %8413 = vmatpush3.bf16.msra.mxu1 %v9138_v60  ;;  %v9181_v60 = vld [vmem:[#allocation5 + $0xf20] sm:$0xff]  }
 0x24f   :  { %8414 = vmatprep.subr.bf16.mxu1 %v9140_v62 }
 0x251   :  { %8393 = vmatpush3.bf16.msra.mxu0 %v9141_v63 }
 0x252   :  { %8394 = vmatprep.subr.bf16.mxu0 %v9143_v1  ;;  %8415 = vmatpush3.bf16.msra.mxu1 %v9142_v0  ;;  %v9183_v0 = vld [vmem:[#allocation5 + $0xf68] sm:$0xff]  }
 0x253   :  { %8416 = vmatprep.subr.bf16.mxu1 %v9144_v3 }
 0x255   :  { %8395 = vmatpush3.bf16.msra.mxu0 %v9145_v5  ;;  %v9182_v5 = vld [vmem:[#allocation5 + $0xfa0] sm:$0xff]  }
 0x256   :  { %8396 = vmatprep.subr.bf16.mxu0 %v9147_v10  ;;  %8417 = vmatpush3.bf16.msra.mxu1 %v9146_v8  ;;  %v9184_v8 = vld [vmem:[#allocation5 + $0xfe8] sm:$0xff]  }
 0x257   :  { %v8094_v2 = vpop.f32.mrb[28].mxu0  ;;  %8418 = vmatprep.subr.bf16.mxu1 %v9148_v14  ;;  %v9185_v10 = vld [vmem:[#allocation5 + $0xf28] sm:$0xff]   ;;  %v9189_v14 = vld [vmem:[#allocation5 + $0xf30] sm:$0xff]  }
 0x258   :  { %v8095_v4 = vpop.f32.mrb[29].mxu0  ;;  %v8116_v6 = vpop.f32.mrb[28].mxu1 }
 0x259   :  { %v8096_v7 = vadd.f32 %v8095_v4, %v8094_v2  ;;  %v8117_v9 = vpop.f32.mrb[29].mxu1  ;;  %v8097_v11 = vpop.f32.mrb[30].mxu0  ;;  %8397 = vmatpush3.bf16.msra.mxu0 %v9149_v19  ;;  %v9196_v19 = vld [vmem:[#allocation2 + $0xcc] ss:$72 sps:$4 sm:$0xff]  }
 0x25a   :  { %v8118_v13 = vadd.f32 %v8117_v9, %v8116_v6  ;;  %v8119_v15 = vpop.f32.mrb[30].mxu1  ;;  %v8098_v16 = vpop.f32.mrb[31].mxu0  ;;  %8398 = vmatprep.subr.bf16.mxu0 %v9151_v21  ;;  %8419 = vmatpush3.bf16.msra.mxu1 %v9150_v20  ;;  %v9187_v11 = vld [vmem:[#allocation5 + $0xf70] sm:$0xff]   ;;  %v9193_v20 = vld [vmem:[#allocation5 + $0xf38] sm:$0xff]  }
 0x25b   :  { %v6083_v12 = vadd.f32 %v8096_v7, %v9699_v24  ;;  %v8120_v17 = vpop.f32.mrb[31].mxu1  ;;  %v9154_v24 = vld [vmem:[#allocation5 + $0xeb0] sm:$0xff]   ;;  %8420 = vmatprep.subr.bf16.mxu1 %v9152_v22  ;;  %v9191_v15 = vld [vmem:[#allocation5 + $0xf78] sm:$0xff]   ;;  %v1855_v22 = vrot.slane %v9196_v19, %v9619_v37  ;;  %v9235_v19 = vld [vmem:[#allocation5 + $0x1100] sm:$0xff]  }
 0x25c   :  { %v9190_v16 = vld [vmem:[#allocation5 + $0xfb0] sm:$0xff]   ;;  %v9192_v17 = vld [vmem:[#allocation5 + $0xff8] sm:$0xff]  }
 0x25d   :  { %v9706_v18 = vadd.f32 %v8118_v13, %v6083_v12  ;;  %8399 = vmatpush3.bf16.msra.mxu0 %v9153_v23  ;;  %v9186_v12 = vld [vmem:[#allocation5 + $0xfa8] sm:$0xff]   ;;  %v9188_v13 = vld [vmem:[#allocation5 + $0xff0] sm:$0xff]   ;;  %v9197_v23 = vld [vmem:[#allocation5 + $0x1040] sm:$0xff]  }
 0x25e   :  { %8400 = vmatprep.subr.bf16.mxu0 %v9155_v25  ;;  %8421 = vmatpush3.bf16.msra.mxu1 %v9154_v24  ;;  %v9194_v24 = vld [vmem:[#allocation5 + $0xfb8] sm:$0xff]  }
 0x25f   :  { %8422 = vmatprep.subr.bf16.mxu1 %v9156_v26 }
 0x261   :  { %8401 = vmatpush3.bf16.msra.mxu0 %v9157_v27  ;;  %v9198_v27 = vld [vmem:[#allocation5 + $0x10c0] sm:$0xff]  }
 0x262   :  { %8430 = vmatprep.subr.bf16.mxu0 %v9163_v30  ;;  %8423 = vmatpush3.bf16.msra.mxu1 %v9158_v31  ;;  %v9200_v31 = vld [vmem:[#allocation5 + $0x1080] sm:$0xff]  }
 0x263   :  { %8452 = vmatprep.subr.bf16.mxu1 %v9164_v34 }
 0x264   :  { %6641 = vmatmul.mubr.bf16.vlgmr.msra.gmra.mrb[56].mxu0 %v1866_v40  ;;  %v9206_v40 = vld [vmem:[#allocation5 + $0x10d0] sm:$0xff]  }
 0x265   :  { %8431 = vmatpush3.bf16.msra.mxu0 %v9165_v38  ;;  %6681 = vmatmul.mubr.bf16.vlgmr.msra.gmra.mrb[56].mxu1 %v1888_v44  ;;  %v9204_v38 = vld [vmem:[#allocation5 + $0x1088] sm:$0xff]   ;;  %v9210_v44 = vld [vmem:[#allocation5 + $0x10d8] sm:$0xff]  }
 0x266   :  { %8432 = vmatprep.subr.bf16.mxu0 %v9167_v42  ;;  %8453 = vmatpush3.bf16.msra.mxu1 %v9166_v41  ;;  %v9207_v41 = vld [vmem:[#allocation5 + $0x1010] sm:$0xff]  }
 0x267   :  { %8454 = vmatprep.subr.bf16.mxu1 %v9168_v45  ;;  %v9208_v42 = vld [vmem:[#allocation5 + $0x1090] sm:$0xff]   ;;  %v9211_v45 = vld [vmem:[#allocation5 + $0x1018] sm:$0xff]  }
 0x269   :  { %8433 = vmatpush3.bf16.msra.mxu0 %v9169_v46  ;;  %v9212_v46 = vld [vmem:[#allocation5 + $0x1098] sm:$0xff]  }
 0x26a   :  { %8434 = vmatprep.subr.bf16.mxu0 %v9171_v48  ;;  %8455 = vmatpush3.bf16.msra.mxu1 %v9170_v47  ;;  %v9213_v47 = vld [vmem:[#allocation5 + $0x1060] sm:$0xff]  }
 0x26b   :  { %8456 = vmatprep.subr.bf16.mxu1 %v9172_v49  ;;  %v9214_v49 = vld [vmem:[#allocation5 + $0x10e0] sm:$0xff]  }
 0x26d   :  { %8435 = vmatpush3.bf16.msra.mxu0 %v9173_v50 }
 0x26e   :  { %8436 = vmatprep.subr.bf16.mxu0 %v9175_v52  ;;  %8457 = vmatpush3.bf16.msra.mxu1 %v9174_v51  ;;  %v9215_v51 = vld [vmem:[#allocation5 + $0x1020] sm:$0xff]  }
 0x26f   :  { %8458 = vmatprep.subr.bf16.mxu1 %v9176_v53 }
 0x271   :  { %8437 = vmatpush3.bf16.msra.mxu0 %v9177_v54  ;;  %v9216_v54 = vld [vmem:[#allocation5 + $0x10a0] sm:$0xff]  }
 0x272   :  { %8438 = vmatprep.subr.bf16.mxu0 %v9179_v56  ;;  %8459 = vmatpush3.bf16.msra.mxu1 %v9178_v55  ;;  %v9217_v56 = vld [vmem:[#allocation5 + $0x1068] sm:$0xff]  }
 0x273   :  { %8460 = vmatprep.subr.bf16.mxu1 %v9180_v58 }
 0x275   :  { %8439 = vmatpush3.bf16.msra.mxu0 %v9181_v60 }
 0x276   :  { %8440 = vmatprep.subr.bf16.mxu0 %v9183_v0  ;;  %8461 = vmatpush3.bf16.msra.mxu1 %v9182_v5  ;;  %v9219_v0 = vld [vmem:[#allocation5 + $0x1028] sm:$0xff]   ;;  %v9223_v5 = vld [vmem:[#allocation5 + $0x1030] sm:$0xff]  }
 0x277   :  { %v8138_v57 = vpop.f32.mrb[32].mxu0  ;;  %8462 = vmatprep.subr.bf16.mxu1 %v9184_v8  ;;  %v9226_v8 = vld [vmem:[#allocation5 + $0x10f8] sm:$0xff]  }
 0x278   :  { %v8139_v59 = vpop.f32.mrb[33].mxu0  ;;  %v8160_v61 = vpop.f32.mrb[32].mxu1 }
 0x279   :  { %v8140_v62 = vadd.f32 %v8139_v59, %v8138_v57  ;;  %v8161_v63 = vpop.f32.mrb[33].mxu1  ;;  %v8141_v3 = vpop.f32.mrb[34].mxu0  ;;  %8441 = vmatpush3.bf16.msra.mxu0 %v9185_v10  ;;  %v9228_v10 = vld [vmem:[#allocation5 + $0x10b8] sm:$0xff]  }
 0x27a   :  { %v8162_v2 = vadd.f32 %v8161_v63, %v8160_v61  ;;  %v8163_v4 = vpop.f32.mrb[34].mxu1  ;;  %v8142_v6 = vpop.f32.mrb[35].mxu0  ;;  %8442 = vmatprep.subr.bf16.mxu0 %v9187_v11  ;;  %8463 = vmatpush3.bf16.msra.mxu1 %v9186_v12  ;;  %v9218_v61 = vld [vmem:[#allocation5 + $0x10e8] sm:$0xff]   ;;  %v9221_v3 = vld [vmem:[#allocation5 + $0x1070] sm:$0xff]  }
 0x27b   :  { %v6163_v1 = vadd.f32 %v8140_v62, %v9706_v18  ;;  %v8164_v9 = vpop.f32.mrb[35].mxu1  ;;  %8464 = vmatprep.subr.bf16.mxu1 %v9188_v13  ;;  %v9195_v18 = vld [vmem:[#allocation2 + $0x3c] ss:$72 sps:$4 sm:$0xff]   ;;  %v9222_v4 = vld [vmem:[#allocation5 + $0x10f0] sm:$0xff]   ;;  %v9229_v11 = vld [vmem:[#allocation2 + $0x40] ss:$72 sps:$4 sm:$0xff]  }
 0x27c   :  { %v1841_v21 = vrot.slane %v9195_v18, %v9619_v37  ;;  %v9224_v6 = vld [vmem:[#allocation5 + $0x10b0] sm:$0xff]   ;;  %v9227_v9 = vld [vmem:[#allocation5 + $0x1038] sm:$0xff]   ;;  %v1902_v13 = vrot.slane %v9229_v11, %v9619_v37 }
 0x27d   :  { %v9713_v7 = vadd.f32 %v8162_v2, %v6163_v1  ;;  %8443 = vmatpush3.bf16.msra.mxu0 %v9189_v14  ;;  %v9220_v2 = vld [vmem:[#allocation5 + $0x10a8] sm:$0xff]   ;;  %v9231_v12 = vld [vmem:[#allocation2 + $0xd0] ss:$72 sps:$4 sm:$0xff]   ;;  %v9233_v14 = vld [vmem:[#allocation5 + $0x1140] sm:$0xff]  }
 0x27e   :  { %8444 = vmatprep.subr.bf16.mxu0 %v9191_v15  ;;  %8465 = vmatpush3.bf16.msra.mxu1 %v9190_v16  ;;  %v1859_v25 = vcombine.high %v1841_v21, %v1855_v22  ;;  %v1858_v26 = vcombine.low %v1841_v21, %v1855_v22  ;;  %v1916_v15 = vrot.slane %v9231_v12, %v9619_v37  ;;  %v9234_v16 = vld [vmem:[#allocation5 + $0x11c0] sm:$0xff]  }
 0x27f   :  { %8466 = vmatprep.subr.bf16.mxu1 %v9192_v17  ;;  %v9236_v22 = vld [vmem:[#allocation5 + $0x1180] sm:$0xff]  }
 0x280   :  { %v1887_v29 = vrot.slane %v1859_v25, %v9619_v37  ;;  %v1873_v30 = vrot.slane %v1858_v26, %v9619_v37  ;;  %v1925_v17 = vcombine.high %v1902_v13, %v1916_v15  ;;  %v1924_v18 = vcombine.low %v1902_v13, %v1916_v15  ;;  %v9238_v26 = vld [vmem:[#allocation5 + $0x11c8] sm:$0xff]  }
 0x281   :  { %8445 = vmatpush3.bf16.msra.mxu0 %v9193_v20 }
 0x282   :  { %8474 = vmatprep.subr.bf16.mxu0 %v9197_v23  ;;  %8467 = vmatpush3.bf16.msra.mxu1 %v9194_v24  ;;  %v1891_v33 = vcombine.high %v1887_v29, %v1887_v29  ;;  %v1889_v34 = vcombine.high %v1873_v30, %v1873_v30  ;;  %v1948_v20 = vrot.slane %v1925_v17, %v9619_v37  ;;  %v9237_v23 = vld [vmem:[#allocation5 + $0x1148] sm:$0xff]  }
 0x283   :  { %6720 = vmatprep.mubr.bf16.mxu0 %v1887_v29  ;;  %8496 = vmatprep.subr.bf16.mxu1 %v9198_v27  ;;  %v1934_v21 = vrot.slane %v1924_v18, %v9619_v37  ;;  %v9239_v27 = vld [vmem:[#allocation5 + $0x1108] sm:$0xff]   ;;  %v9241_v29 = vld [vmem:[#allocation5 + $0x1150] sm:$0xff]  }
 0x284   :  { %6721 = vmatmul.mubr.bf16.vlgmr.msra.gmra.mrb[60].mxu0 %v1873_v30  ;;  %6760 = vmatprep.mubr.bf16.mxu1 %v1891_v33  ;;  %v1958_v24 = vcombine.high %v1948_v20, %v1948_v20  ;;  %v9242_v30 = vld [vmem:[#allocation5 + $0x11d0] sm:$0xff]   ;;  %v9245_v33 = vld [vmem:[#allocation5 + $0x1158] sm:$0xff]  }
 0x285   :  { %8475 = vmatpush3.bf16.msra.mxu0 %v9199_v28  ;;  %6761 = vmatmul.mubr.bf16.vlgmr.msra.gmra.mrb[60].mxu1 %v1889_v34  ;;  %v1956_v25 = vcombine.high %v1934_v21, %v1934_v21  ;;  %v9240_v28 = vld [vmem:[#allocation5 + $0x1188] sm:$0xff]   ;;  %v9246_v34 = vld [vmem:[#allocation5 + $0x11d8] sm:$0xff]  }
 0x286   :  { %8476 = vmatprep.subr.bf16.mxu0 %v9201_v32  ;;  %8497 = vmatpush3.bf16.msra.mxu1 %v9200_v31  ;;  %v9243_v31 = vld [vmem:[#allocation5 + $0x1110] sm:$0xff]  }
 0x287   :  { %8498 = vmatprep.subr.bf16.mxu1 %v9202_v35  ;;  %6800 = vmatprep.mubr.bf16.mxu0 %v1948_v20  ;;  %v9244_v32 = vld [vmem:[#allocation5 + $0x1190] sm:$0xff]   ;;  %v9247_v35 = vld [vmem:[#allocation5 + $0x1118] sm:$0xff]  }
 0x288   :  { %6840 = vmatprep.mubr.bf16.mxu1 %v1958_v24 }
 0x289   :  { %8477 = vmatpush3.bf16.msra.mxu0 %v9203_v36  ;;  %v9248_v36 = vld [vmem:[#allocation5 + $0x1198] sm:$0xff]  }
 0x28a   :  { %8478 = vmatprep.subr.bf16.mxu0 %v9205_v39  ;;  %8499 = vmatpush3.bf16.msra.mxu1 %v9204_v38  ;;  %v9249_v39 = vld [vmem:[#allocation5 + $0x1160] sm:$0xff]  }
 0x28b   :  { %8500 = vmatprep.subr.bf16.mxu1 %v9206_v40 }
 0x28d   :  { %8479 = vmatpush3.bf16.msra.mxu0 %v9207_v41  ;;  %v9250_v41 = vld [vmem:[#allocation5 + $0x11e0] sm:$0xff]  }
 0x28e   :  { %8480 = vmatprep.subr.bf16.mxu0 %v9209_v43  ;;  %8501 = vmatpush3.bf16.msra.mxu1 %v9208_v42 }
 0x28f   :  { %8502 = vmatprep.subr.bf16.mxu1 %v9210_v44  ;;  %v9251_v44 = vld [vmem:[#allocation5 + $0x1120] sm:$0xff]  }
 0x291   :  { %8481 = vmatpush3.bf16.msra.mxu0 %v9211_v45 }
 0x292   :  { %8482 = vmatprep.subr.bf16.mxu0 %v9213_v47  ;;  %8503 = vmatpush3.bf16.msra.mxu1 %v9212_v46  ;;  %v9252_v46 = vld [vmem:[#allocation5 + $0x11a0] sm:$0xff]  }
 0x293   :  { %8504 = vmatprep.subr.bf16.mxu1 %v9214_v49  ;;  %v9253_v49 = vld [vmem:[#allocation5 + $0x1168] sm:$0xff]  }
 0x295   :  { %8483 = vmatpush3.bf16.msra.mxu0 %v9215_v51 }
 0x296   :  { %8484 = vmatprep.subr.bf16.mxu0 %v9217_v56  ;;  %8505 = vmatpush3.bf16.msra.mxu1 %v9216_v54  ;;  %v9255_v54 = vld [vmem:[#allocation5 + $0x1128] sm:$0xff]  }
 0x297   :  { %v8182_v48 = vpop.f32.mrb[36].mxu0  ;;  %8506 = vmatprep.subr.bf16.mxu1 %v9218_v61  ;;  %v9260_v61 = vld [vmem:[#allocation5 + $0x11b0] sm:$0xff]  }
 0x298   :  { %v8183_v50 = vpop.f32.mrb[37].mxu0  ;;  %v8204_v52 = vpop.f32.mrb[36].mxu1 }
 0x299   :  { %v8184_v53 = vadd.f32 %v8183_v50, %v8182_v48  ;;  %v8205_v55 = vpop.f32.mrb[37].mxu1  ;;  %v8185_v59 = vpop.f32.mrb[38].mxu0  ;;  %8485 = vmatpush3.bf16.msra.mxu0 %v9219_v0  ;;  %v9263_v0 = vld [vmem:[#allocation5 + $0x1138] sm:$0xff]  }
 0x29a   :  { %v8206_v58 = vadd.f32 %v8205_v55, %v8204_v52  ;;  %v8207_v60 = vpop.f32.mrb[38].mxu1  ;;  %v8186_v62 = vpop.f32.mrb[39].mxu0  ;;  %8486 = vmatprep.subr.bf16.mxu0 %v9221_v3  ;;  %8507 = vmatpush3.bf16.msra.mxu1 %v9220_v2  ;;  %v9258_v59 = vld [vmem:[#allocation5 + $0x11f0] sm:$0xff]   ;;  %v9264_v3 = vld [vmem:[#allocation5 + $0x11b8] sm:$0xff]  }
 0x29b   :  { %v6243_v57 = vadd.f32 %v8184_v53, %v9713_v7  ;;  %v8208_v1 = vpop.f32.mrb[39].mxu1  ;;  %v9225_v7 = vld [vmem:[#allocation5 + $0x1078] sm:$0xff]   ;;  %8508 = vmatprep.subr.bf16.mxu1 %v9222_v4  ;;  %v9254_v53 = vld [vmem:[#allocation5 + $0x11e8] sm:$0xff]   ;;  %v9259_v60 = vld [vmem:[#allocation5 + $0x1130] sm:$0xff]  }
 0x29c   :  { %v9261_v62 = vld [vmem:[#allocation5 + $0x1178] sm:$0xff]   ;;  %v9265_v1 = vld [vmem:[#allocation2 + $0x44] ss:$72 sps:$4 sm:$0xff]  }
 0x29d   :  { %v9720_v63 = vadd.f32 %v8206_v58, %v6243_v57  ;;  %8487 = vmatpush3.bf16.msra.mxu0 %v9223_v5  ;;  %v9256_v57 = vld [vmem:[#allocation5 + $0x11a8] sm:$0xff]   ;;  %v9257_v58 = vld [vmem:[#allocation5 + $0x1170] sm:$0xff]   ;;  %v1909_v4 = vrot.slane %v9265_v1, %v9619_v37 }
 0x29e   :  { %8488 = vmatprep.subr.bf16.mxu0 %v9225_v7  ;;  %8509 = vmatpush3.bf16.msra.mxu1 %v9224_v6  ;;  %v9266_v2 = vld [vmem:[#allocation2 + $0xd4] ss:$72 sps:$4 sm:$0xff]  }
 0x29f   :  { %8510 = vmatprep.subr.bf16.mxu1 %v9226_v8  ;;  %v1923_v5 = vrot.slane %v9266_v2, %v9619_v37 }
 0x2a1   :  { %8489 = vmatpush3.bf16.msra.mxu0 %v9227_v9  ;;  %v1927_v6 = vcombine.high %v1909_v4, %v1923_v5  ;;  %v1926_v7 = vcombine.low %v1909_v4, %v1923_v5 }
 0x2a2   :  { %8518 = vmatprep.subr.bf16.mxu0 %v9233_v14  ;;  %8511 = vmatpush3.bf16.msra.mxu1 %v9228_v10 }
 0x2a3   :  { %8540 = vmatprep.subr.bf16.mxu1 %v9234_v16  ;;  %v1955_v8 = vrot.slane %v1927_v6, %v9619_v37  ;;  %v1941_v9 = vrot.slane %v1926_v7, %v9619_v37 }
 0x2a4   :  { %6801 = vmatmul.mubr.bf16.vlgmr.msra.gmra.mrb[64].mxu0 %v1934_v21 }
 0x2a5   :  { %8519 = vmatpush3.bf16.msra.mxu0 %v9235_v19  ;;  %6841 = vmatmul.mubr.bf16.vlgmr.msra.gmra.mrb[64].mxu1 %v1956_v25  ;;  %v1959_v10 = vcombine.high %v1955_v8, %v1955_v8  ;;  %v1957_v11 = vcombine.high %v1941_v9, %v1941_v9 }
 0x2a6   :  { %8520 = vmatprep.subr.bf16.mxu0 %v9237_v23  ;;  %8541 = vmatpush3.bf16.msra.mxu1 %v9236_v22 }
 0x2a7   :  { %8542 = vmatprep.subr.bf16.mxu1 %v9238_v26  ;;  %6880 = vmatprep.mubr.bf16.mxu0 %v1955_v8 }
 0x2a8   :  { %6920 = vmatprep.mubr.bf16.mxu1 %v1959_v10 }
 0x2a9   :  { %8521 = vmatpush3.bf16.msra.mxu0 %v9239_v27 }
 0x2aa   :  { %8522 = vmatprep.subr.bf16.mxu0 %v9241_v29  ;;  %8543 = vmatpush3.bf16.msra.mxu1 %v9240_v28 }
 0x2ab   :  { %8544 = vmatprep.subr.bf16.mxu1 %v9242_v30 }
 0x2ad   :  { %8523 = vmatpush3.bf16.msra.mxu0 %v9243_v31 }
 0x2ae   :  { %8524 = vmatprep.subr.bf16.mxu0 %v9245_v33  ;;  %8545 = vmatpush3.bf16.msra.mxu1 %v9244_v32 }
 0x2af   :  { %8546 = vmatprep.subr.bf16.mxu1 %v9246_v34 }
 0x2b1   :  { %8525 = vmatpush3.bf16.msra.mxu0 %v9247_v35  ;;  %v9267_v35 = vld [vmem:[#allocation8] sm:$0xff]  }
 0x2b2   :  { %8526 = vmatprep.subr.bf16.mxu0 %v9249_v39  ;;  %8547 = vmatpush3.bf16.msra.mxu1 %v9248_v36  ;;  %v9481_v36 = vmov 0.0   ;;  %v9269_v39 = vld [vmem:[#allocation8 + $0x10] sm:$0xff]  }
 0x2b3   :  { %8548 = vmatprep.subr.bf16.mxu1 %v9250_v41  ;;  %v9271_v41 = vld [vmem:[#allocation8 + $0x20] sm:$0xff]  }
 0x2b5   :  { %8527 = vmatpush3.bf16.msra.mxu0 %v9251_v44 }
 0x2b6   :  { %8528 = vmatprep.subr.bf16.mxu0 %v9253_v49  ;;  %8549 = vmatpush3.bf16.msra.mxu1 %v9252_v46 }
 0x2b7   :  { %v8226_v38 = vpop.f32.mrb[40].mxu0  ;;  %8550 = vmatprep.subr.bf16.mxu1 %v9254_v53 }
 0x2b8   :  { %v8227_v40 = vpop.f32.mrb[41].mxu0  ;;  %v8248_v42 = vpop.f32.mrb[40].mxu1 }
 0x2b9   :  { %v8228_v43 = vadd.f32 %v8227_v40, %v8226_v38  ;;  %v8249_v45 = vpop.f32.mrb[41].mxu1  ;;  %v8229_v50 = vpop.f32.mrb[42].mxu0  ;;  %8529 = vmatpush3.bf16.msra.mxu0 %v9255_v54  ;;  %v9268_v38 = vld [vmem:[#allocation8 + $0x8] sm:$0xff]   ;;  %v9270_v40 = vld [vmem:[#allocation8 + $0x18] sm:$0xff]  }
 0x2ba   :  { %v8250_v48 = vadd.f32 %v8249_v45, %v8248_v42  ;;  %v8251_v51 = vpop.f32.mrb[42].mxu1  ;;  %v8230_v55 = vpop.f32.mrb[43].mxu0  ;;  %8530 = vmatprep.subr.bf16.mxu0 %v9257_v58  ;;  %8551 = vmatpush3.bf16.msra.mxu1 %v9256_v57  ;;  %v9272_v54 = vld [vmem:[#allocation8 + $0x28] sm:$0xff]  }
 0x2bb   :  { %v6323_v47 = vadd.f32 %v8228_v43, %v9720_v63  ;;  %v8252_v56 = vpop.f32.mrb[43].mxu1  ;;  %v9262_v63 = vld [vmem:[#allocation5 + $0x11f8] sm:$0xff]   ;;  %8552 = vmatprep.subr.bf16.mxu1 %v9258_v59  ;;  %v9275_v57 = vld [vmem:[#allocation11] sm:$0xff]   ;;  %v9276_v58 = vld [vmem:[#allocation11 + $0x8] sm:$0xff]  }
 0x2bc   :  { %v9273_v55 = vld [vmem:[#allocation8 + $0x30] sm:$0xff]   ;;  %v9274_v56 = vld [vmem:[#allocation8 + $0x38] sm:$0xff]  }
 0x2bd   :  { %v6363_v52 = vadd.f32 %v8250_v48, %v6323_v47  ;;  %8531 = vmatpush3.bf16.msra.mxu0 %v9259_v60  ;;  %v9277_v59 = vld [vmem:[#allocation11 + $0x10] sm:$0xff]   ;;  %v9278_v60 = vld [vmem:[#allocation11 + $0x18] sm:$0xff]  }
 0x2be   :  { %8532 = vmatprep.subr.bf16.mxu0 %v9261_v62  ;;  %8553 = vmatpush3.bf16.msra.mxu1 %v9260_v61  ;;  %v9279_v61 = vld [vmem:[#allocation11 + $0x20] sm:$0xff]  }
 0x2bf   :  { %8554 = vmatprep.subr.bf16.mxu1 %v9262_v63 }
 0x2c1   :  { %8533 = vmatpush3.bf16.msra.mxu0 %v9263_v0 }
 0x2c2   :  { %8555 = vmatpush3.bf16.msra.mxu1 %v9264_v3  ;;  %8580 = vmatprep.subr.bf16.mxu0 %v9481_v36  ;;  %v9280_v3 = vld [vmem:[#allocation11 + $0x28] sm:$0xff]  }
 0x2c3   :  { %8600 = vmatprep.subr.bf16.mxu1 %v9481_v36 }
 0x2c4   :  { %6881 = vmatmul.mubr.bf16.vlgmr.msra.gmra.mrb[68].mxu0 %v1941_v9 }
 0x2c5   :  { %6921 = vmatmul.mubr.bf16.vlgmr.msra.gmra.mrb[68].mxu1 %v1957_v11  ;;  %8581 = vmatpush3.bf16.msra.mxu0 %v9267_v35 }
 0x2c6   :  { %8582 = vmatprep.subr.bf16.mxu0 %v9481_v36  ;;  %8596 = vmatprep.mubr.msk.bf16.mxu0 %vm9482_vm0, %v9481_v36 }
 0x2c7   :  { %8616 = vmatprep.mubr.msk.bf16.mxu1 %vm9482_vm0, %v9481_v36  ;;  %8601 = vmatpush3.bf16.msra.mxu1 %v9275_v57 }
 0x2c8   :  { %8602 = vmatprep.subr.bf16.mxu1 %v9481_v36 }
 0x2c9   :  { %8583 = vmatpush3.bf16.msra.mxu0 %v9268_v38 }
 0x2ca   :  { %8584 = vmatprep.subr.bf16.mxu0 %v9481_v36 }
 0x2cb   :  { %8603 = vmatpush3.bf16.msra.mxu1 %v9276_v58 }
 0x2cc   :  { %8604 = vmatprep.subr.bf16.mxu1 %v9481_v36 }
 0x2cd   :  { %8585 = vmatpush3.bf16.msra.mxu0 %v9269_v39 }
 0x2ce   :  { %8586 = vmatprep.subr.bf16.mxu0 %v9481_v36 }
 0x2cf   :  { %8605 = vmatpush3.bf16.msra.mxu1 %v9277_v59 }
 0x2d0   :  { %8606 = vmatprep.subr.bf16.mxu1 %v9481_v36 }
 0x2d1   :  { %8587 = vmatpush3.bf16.msra.mxu0 %v9270_v40 }
 0x2d2   :  { %8588 = vmatprep.subr.bf16.mxu0 %v9481_v36 }
 0x2d3   :  { %8607 = vmatpush3.bf16.msra.mxu1 %v9278_v60  ;;  %v7761_v60 = vld [vmem:[#allocation13] ss:$0 sm:$0xff] }
 0x2d4   :  { %8608 = vmatprep.subr.bf16.mxu1 %v9481_v36 }
 0x2d5   :  { %8589 = vmatpush3.bf16.msra.mxu0 %v9271_v41 }
 0x2d6   :  { %8590 = vmatprep.subr.bf16.mxu0 %v9481_v36 }
 0x2d7   :  { %v8270_v12 = vpop.f32.mrb[44].mxu0  ;;  %8609 = vmatpush3.bf16.msra.mxu1 %v9279_v61 }
 0x2d8   :  { %v8271_v13 = vpop.f32.mrb[45].mxu0  ;;  %v8292_v14 = vpop.f32.mrb[44].mxu1  ;;  %8610 = vmatprep.subr.bf16.mxu1 %v9481_v36 }
 0x2d9   :  { %v8272_v15 = vadd.f32 %v8271_v13, %v8270_v12  ;;  %v8273_v16 = vpop.f32.mrb[46].mxu0  ;;  %v8293_v17 = vpop.f32.mrb[45].mxu1  ;;  %8591 = vmatpush3.bf16.msra.mxu0 %v9272_v54 }
 0x2da   :  { %v8274_v18 = vpop.f32.mrb[47].mxu0  ;;  %v8294_v20 = vadd.f32 %v8293_v17, %v8292_v14  ;;  %v8295_v21 = vpop.f32.mrb[46].mxu1  ;;  %8592 = vmatprep.subr.bf16.mxu0 %v9481_v36 }
 0x2db   :  { %v6403_v19 = vadd.f32 %v8272_v15, %v6363_v52  ;;  %v8296_v22 = vpop.f32.mrb[47].mxu1  ;;  %8611 = vmatpush3.bf16.msra.mxu1 %v9280_v3 }
 0x2dc   :  { %8612 = vmatprep.subr.bf16.mxu1 %v9481_v36 }
 0x2dd   :  { %v6443_v23 = vadd.f32 %v8294_v20, %v6403_v19  ;;  %8593 = vmatpush3.bf16.msra.mxu0 %v9273_v55 }
 0x2de   :  { %8594 = vmatprep.subr.bf16.mxu0 %v9481_v36 }
 0x2e1   :  { %8595 = vmatpush3.bf16.msra.mxu0 %v9274_v56 }
 0x2f7   :  { %v8314_v37 = vpop.f32.mrb[48].mxu0 }
 0x2f8   :  { %v8315_v24 = vpop.f32.mrb[49].mxu0  ;;  %v8336_v25 = vpop.f32.mrb[48].mxu1 }
 0x2f9   :  { %v8316_v26 = vadd.f32 %v8315_v24, %v8314_v37  ;;  %v8317_v27 = vpop.f32.mrb[50].mxu0  ;;  %v8337_v28 = vpop.f32.mrb[49].mxu1 }
 0x2fa   :  { %v8318_v29 = vpop.f32.mrb[51].mxu0  ;;  %v8338_v31 = vadd.f32 %v8337_v28, %v8336_v25  ;;  %v8339_v32 = vpop.f32.mrb[50].mxu1 }
 0x2fb   :  { %v6483_v30 = vadd.f32 %v8316_v26, %v6443_v23  ;;  %v8340_v33 = vpop.f32.mrb[51].mxu1 }
 0x2fd   :  { %v6523_v34 = vadd.f32 %v8338_v31, %v6483_v30 }
 0x317   :  { %v8358_v42 = vpop.f32.mrb[52].mxu0 }
 0x318   :  { %v8359_v43 = vpop.f32.mrb[53].mxu0  ;;  %v8380_v44 = vpop.f32.mrb[52].mxu1 }
 0x319   :  { %v8360_v45 = vadd.f32 %v8359_v43, %v8358_v42  ;;  %v8361_v46 = vpop.f32.mrb[54].mxu0  ;;  %v8381_v47 = vpop.f32.mrb[53].mxu1 }
 0x31a   :  { %v8362_v48 = vpop.f32.mrb[55].mxu0  ;;  %v8382_v50 = vadd.f32 %v8381_v47, %v8380_v44  ;;  %v8383_v51 = vpop.f32.mrb[54].mxu1 }
 0x31b   :  { %v6563_v49 = vadd.f32 %v8360_v45, %v6523_v34  ;;  %v8384_v52 = vpop.f32.mrb[55].mxu1  ;;  %v9282_v51 = vld [vmem:[#allocation11 + $0x38] sm:$0xff]  }
 0x31c   :  { %v7752_v52 = vld [vmem:[#allocation10] ss:$0 sm:$0xff] }
 0x31d   :  { %v6603_v53 = vadd.f32 %v8382_v50, %v6563_v49  ;;  %v9281_v50 = vld [vmem:[#allocation11 + $0x30] sm:$0xff]  }
 0x31e   :  { %8613 = vmatpush3.bf16.msra.mxu1 %v9281_v50 }
 0x31f   :  { %8614 = vmatprep.subr.bf16.mxu1 %v9481_v36 }
 0x322   :  { %8615 = vmatpush3.bf16.msra.mxu1 %v9282_v51 }
 0x337   :  { %v8402_v62 = vpop.f32.mrb[56].mxu0 }
 0x338   :  { %v8403_v63 = vpop.f32.mrb[57].mxu0  ;;  %v8424_v0 = vpop.f32.mrb[56].mxu1 }
 0x339   :  { %v8404_v1 = vadd.f32 %v8403_v63, %v8402_v62  ;;  %v8405_v2 = vpop.f32.mrb[58].mxu0  ;;  %v8425_v4 = vpop.f32.mrb[57].mxu1 }
 0x33a   :  { %v8406_v5 = vpop.f32.mrb[59].mxu0  ;;  %v8426_v7 = vadd.f32 %v8425_v4, %v8424_v0  ;;  %v8427_v8 = vpop.f32.mrb[58].mxu1 }
 0x33b   :  { %v6643_v6 = vadd.f32 %v8404_v1, %v6603_v53  ;;  %v8428_v9 = vpop.f32.mrb[59].mxu1 }
 0x33d   :  { %v6683_v10 = vadd.f32 %v8426_v7, %v6643_v6 }
 0x357   :  { %v8446_v11 = vpop.f32.mrb[60].mxu0 }
 0x358   :  { %v8447_v12 = vpop.f32.mrb[61].mxu0  ;;  %v8468_v13 = vpop.f32.mrb[60].mxu1 }
 0x359   :  { %v8448_v14 = vadd.f32 %v8447_v12, %v8446_v11  ;;  %v8449_v15 = vpop.f32.mrb[62].mxu0  ;;  %v8469_v16 = vpop.f32.mrb[61].mxu1 }
 0x35a   :  { %v8450_v17 = vpop.f32.mrb[63].mxu0  ;;  %v8470_v19 = vadd.f32 %v8469_v16, %v8468_v13  ;;  %v8471_v20 = vpop.f32.mrb[62].mxu1 }
 0x35b   :  { %v6723_v18 = vadd.f32 %v8448_v14, %v6683_v10  ;;  %v8472_v21 = vpop.f32.mrb[63].mxu1 }
 0x35d   :  { %v6763_v22 = vadd.f32 %v8470_v19, %v6723_v18 }
 0x377   :  { %v8490_v23 = vpop.f32.mrb[64].mxu0 }
 0x378   :  { %v8491_v37 = vpop.f32.mrb[65].mxu0  ;;  %v8512_v24 = vpop.f32.mrb[64].mxu1 }
 0x379   :  { %v8492_v25 = vadd.f32 %v8491_v37, %v8490_v23  ;;  %v8493_v26 = vpop.f32.mrb[66].mxu0  ;;  %v8513_v27 = vpop.f32.mrb[65].mxu1 }
 0x37a   :  { %v8494_v28 = vpop.f32.mrb[67].mxu0  ;;  %v8514_v30 = vadd.f32 %v8513_v27, %v8512_v24  ;;  %v8515_v31 = vpop.f32.mrb[66].mxu1 }
 0x37b   :  { %v6803_v29 = vadd.f32 %v8492_v25, %v6763_v22  ;;  %v8516_v32 = vpop.f32.mrb[67].mxu1 }
 0x37d   :  { %v6843_v33 = vadd.f32 %v8514_v30, %v6803_v29 }
 0x397   :  { %v8534_v34 = vpop.f32.mrb[68].mxu0 }
 0x398   :  { %v8535_v35 = vpop.f32.mrb[69].mxu0  ;;  %v8556_v38 = vpop.f32.mrb[68].mxu1 }
 0x399   :  { %v8536_v39 = vadd.f32 %v8535_v35, %v8534_v34  ;;  %v8537_v40 = vpop.f32.mrb[70].mxu0  ;;  %v8557_v41 = vpop.f32.mrb[69].mxu1 }
 0x39a   :  { %v8538_v42 = vpop.f32.mrb[71].mxu0  ;;  %v8558_v44 = vadd.f32 %v8557_v41, %v8556_v38  ;;  %v8559_v45 = vpop.f32.mrb[70].mxu1 }
 0x39b   :  { %v6883_v43 = vadd.f32 %v8536_v39, %v6843_v33  ;;  %v8560_v46 = vpop.f32.mrb[71].mxu1 }
 0x39d   :  { %v6923_v47 = vadd.f32 %v8558_v44, %v6883_v43 }
 0x39f   :  { %v6928_v48 = vmax.f32 %v6923_v47, 0.0 }
 0x3a1   :  { %v6929_v49 = vpack.c.bf16 %v6928_v48, %v6928_v48 }
 0x3a3   :  { %8597 = vmatmul.mubr.bf16.vlgmr.msra.gmra.mrb[72].mxu0 %v6929_v49 }
 0x476   :  { %v7035_v53 = vpop.f32.mrb[72].mxu0 }
 0x477   :  { %v7036_v54 = vadd.f32 %v7752_v52, %v7035_v53  ;;  %v8598_v55 = vpop.f32.mrb[73].mxu0 }
 0x478   :  { %v7038_v56 = vpop.f32.mrb[74].mxu0 }
 0x479   :  { %v7041_v57 = vmax.f32 %v7036_v54, 0.0  ;;  %v8599_v58 = vpop.f32.mrb[75].mxu0 }
 0x47b   :  { %v7042_v59 = vpack.c.bf16 %v7041_v57, %v7041_v57 }
 0x47d   :  { %8617 = vmatmul.mubr.bf16.vlgmr.msra.gmra.mrb[72].mxu1 %v7042_v59 }
 0x550   :  { %v7148_v61 = vpop.f32.mrb[72].mxu1 }
 0x551   :  { %v7149_v62 = vadd.f32 %v7761_v60, %v7148_v61  ;;  %v8618_v63 = vpop.f32.mrb[73].mxu1 }
 0x552   :  { %v7151_v0 = vpop.f32.mrb[74].mxu1 }
 0x553   :  { %7154 = vst [vmem:[#allocation14] sm:$0xff] %v7149_v62  ;;  %v8619_v1 = vpop.f32.mrb[75].mxu1 }
 0x554   :  { %7159 = vsyncadd [#allocation4], 96  ;;  %s9483_s6 = smov [#allocation14]  }
 0x555   :  { %s7160_s15 = sshll.u32 %s9483_s6, 4  ;;  %s7161_s15 = int_to_ptr.vmem [resolvable:$true] %s7160_s15 }
 0x556   :  { %s9437_s0 = scalar_lea.vmem %s7161_s15, 32  ;;  %s9441_s16 = scalar_lea.vmem %s7161_s15, 128 }
 0x557   :  { %p9438_p0 = scmp.ne.s32.totalorder %s7161_s15, %s9437_s0  ;;  %p9442_p1 = scmp.lt.s32.totalorder %s7161_s15, %s7161_s15 }
 0x558   :  { %p9443_p2 = scmp.lt.s32.totalorder %s9441_s16, %s9437_s0 }
 0x55a   :  { %p9444_p3 = por %p9443_p2, %p9442_p1 }
 0x55c   :  { %p9445_p4 = pnand %p9444_p3, %p9438_p0 }
 0x55e   :  { %9448 = shalt.err (!%p9445_p4)
}
 0x55f   :  { %s9449_s20 = scalar_lea.hbm %s9768_s7, 32 }
 0x560   :  { %p9450_p5 = scmp.ne.s32.totalorder %s9768_s7, %s9449_s20  ;;  %p9453_p6 = scmp.lt.u32.totalorder %s9449_s20, %s9768_s7 }
 0x562   :  { %p9455_p7 = pnand %p9453_p6, %p9450_p5 }
 0x564   :  { %9458 = shalt.err (!%p9455_p7)
}
 0x565   :  { %s9484_s26 = smov 32   ;;  %s9485_s1 = smov 2  }
 0x566   :  { %7166 = dma.vmem_to_hbm [thread:$0]  %s7161_s15, 32, %s9768_s7, [#allocation4], %s9484_s26, %s9484_s26, %s9485_s1  }
 0x567   :  { %9467 = dma.done.wait [#allocation4], 128  }
 0x568   :  { %9468 = vsyncadd [#allocation4], 4294967168 }
 0x569   :  { %7170 = vsyncpa [#allocation3], 1 }
 0x56a   :  { %7171 = vsyncpa [#allocation6], 1 }
 0x56b   :  { %7172 = vsyncpa [#allocation9], 1 }
 0x56c   :  { %7173 = vsyncpa [#allocation12], 1 }
 0x56d   :  { %7174 = vsyncpa [#allocation4], 1 }

</bundles_post_ra>
